<compile_context>
chip_gen: v7x
topology: tpu7x:2x2x1
jax: 0.10.0
libtpu: 0.0.40
codegen_flags: <defaults>
</compile_context>

<pallas_src>
import functools

import jax
import jax.numpy as jnp
import numpy as np
from jax import lax
from jax.experimental import pallas as pl
from jax.experimental.pallas import tpu as pltpu


def _round_up(v, mult):
    return -(-v // mult) * mult


def _shrink(x, th):
    # self_active(x, th) = relu(x - th) - relu(-x - th).  For the non-negative
    # thresholds this module uses this equals the soft-threshold
    # x - clip(x, -th, th), which needs only max+min+sub on the VPU.
    return x - jnp.clip(x, -th, th)


def _dladmm_kernel(x_ref, a_ref, z0_ref, e0_ref, l0_ref,
                   w_ref, b1_ref, b2_ref, b3_ref, ss2_ref, ap_ref, ap1_ref,
                   z_out, e_out, l_out, *, mm_dtype, unroll):
    layers = w_ref.shape[0]

    # Prologue: initial ADMM state for this batch tile (carried in registers).
    Z0 = z0_ref[...]                                   # (d, bt)
    E0 = e0_ref[...]                                   # (m, bt)
    L0 = l0_ref[...]                                   # (m, bt)
    T0 = (jnp.dot(a_ref[...].astype(mm_dtype), Z0.astype(mm_dtype),
                  preferred_element_type=jnp.float32)
          + E0 - x_ref[...])

    def layer(k, carry):
        Z, E, L, T = carry
        # Re-load X / A from VMEM each iteration: vld slots (3/cycle) are far
        # cheaper than the vreg spills a long-lived hoisted copy would cause
        # under unrolling.
        X = x_ref[...]
        A = a_ref[...].astype(mm_dtype)

        W = w_ref[k].astype(mm_dtype)                  # (d, m)
        b1 = b1_ref[k]                                 # (m, 1)
        b2 = b2_ref[k]
        b3 = b3_ref[k]
        ss2 = ss2_ref[k]
        ap = ap_ref[k]                                 # (d, 1)
        ap1 = ap1_ref[k]                               # (m, 1)

        # Var = L + beta1 * T ; Z_new = shrink(Z - W @ Var, active_para)
        var = L + b1 * T
        z_new = _shrink(
            Z - jnp.dot(W, var.astype(mm_dtype),
                        preferred_element_type=jnp.float32),
            ap)
        # az - X is shared between VVar and T_new.
        az_minus_x = jnp.dot(A, z_new.astype(mm_dtype),
                             preferred_element_type=jnp.float32) - X
        # VVar uses the *old* E (matches the PyTorch module).
        vvar = L + b2 * (az_minus_x + E)
        e_new = _shrink(E - ss2 * vvar, ap1)
        t_new = az_minus_x + e_new
        l_new = L + b3 * t_new

        # Single lane-dense store of each per-layer output; carry stays in regs.
        z_out[k] = z_new.astype(z_out.dtype)
        e_out[k] = e_new.astype(e_out.dtype)
        l_out[k] = l_new.astype(l_out.dtype)
        return z_new, e_new, l_new, t_new

    lax.fori_loop(0, layers, layer, (Z0, E0, L0, T0), unroll=unroll)


def _vmem_budget_bytes():
    """Per-TensorCore VMEM budget: ~75% of physical capacity.

    v7x: 64 MiB/TC -> ~48 MiB budget; v5e/v6e: 128 MiB -> ~96 MiB.  The
    remaining ~25% is headroom for compiler-internal scratch.
    """
    cap = 64 << 20  # conservative default if the query is unavailable
    try:
        info = pltpu.get_tpu_info()
        cap = int(getattr(info, "vmem_capacity_bytes", cap) or cap)
    except Exception:  # pragma: no cover - defensive (e.g. interpret mode)
        pass
    return max(32 << 20, (cap * 3) // 4)


def dladmm_forward(X, A, Z0, E0, L0, W, beta1, beta2, beta3, ss2, ap, ap1,
                   *, mm_dtype=jnp.float32, out_dtype=jnp.float32,
                   md_align=8, max_batch_tile=1024, unroll=4):
    """Pallas forward for DLADMMNet.

    mm_dtype: operand dtype at the MXU (accumulation is always f32).  Use
        jnp.bfloat16 on v6e/v7x for matmul-bound sizes (2-3x on the MXU path).
    out_dtype: dtype of the per-layer Z/E/L stacks (bf16 halves HBM writeback).
    md_align: pad m and d up to this multiple (8 = sublane; use 128/256 for
        large models to fill full MXU passes).
    """
    layers = W.shape[0]
    m, d = A.shape
    b = X.shape[1]

    lane = 128
    f32b = 4
    outb = jnp.dtype(out_dtype).itemsize

    # ---- pad m / d (zero padding is exact for this recursion) -------------
    pm = _round_up(m, md_align)
    pd = _round_up(d, md_align)
    if (pm, pd) != (m, d):
        A = jnp.pad(A, ((0, pm - m), (0, pd - d)))
        W = jnp.pad(W, ((0, 0), (0, pd - d), (0, pm - m)))
        X = jnp.pad(X, ((0, pm - m), (0, 0)))
        E0 = jnp.pad(E0, ((0, pm - m), (0, 0)))
        L0 = jnp.pad(L0, ((0, pm - m), (0, 0)))
        Z0 = jnp.pad(Z0, ((0, pd - d), (0, 0)))
        pad_m = lambda t: jnp.pad(t, ((0, 0), (0, pm - m), (0, 0)))
        beta1, beta2, beta3, ss2, ap1 = map(pad_m, (beta1, beta2, beta3, ss2, ap1))
        ap = jnp.pad(ap, ((0, 0), (0, pd - d), (0, 0)))

    # ---- VMEM footprint model (accounts for (8,128) block padding) --------
    resident_bytes = f32b * (
        pm * max(pd, lane)                      # A
        + layers * pd * max(pm, lane)           # fc weights W
        + layers * (5 * pm + pd) * lane)        # six (.,1) parameter vectors
    per_col_bytes = (
        2 * f32b * (3 * pm + pd)                # X, E0, L0, Z0 (double-buffered)
        + 2 * outb * layers * (pd + 2 * pm))    # per-layer Z/E/L output slab

    budget = _vmem_budget_bytes()
    headroom = 4 << 20

    # ---- derive the batch tile from the budget -----------------------------
    avail = max(0, budget - resident_bytes - headroom)
    bt = min(int(max_batch_tile), avail // max(per_col_bytes, 1))
    bt = max(lane, (bt // lane) * lane)
    bt = min(bt, _round_up(b, lane))            # never wider than the batch
    # v7x megacore: prefer >= 2 batch tiles so both TensorCores get work.
    if b > lane and bt >= b:
        bt = max(lane, _round_up(-(-b // 2), lane))

    pb = _round_up(b, bt)
    if pb != b:
        pad_cfg = ((0, 0), (0, pb - b))
        X = jnp.pad(X, pad_cfg)
        Z0 = jnp.pad(Z0, pad_cfg)
        E0 = jnp.pad(E0, pad_cfg)
        L0 = jnp.pad(L0, pad_cfg)
    n_tiles = pb // bt

    vmem_limit = int(min(budget, resident_bytes + per_col_bytes * bt + headroom))
    vmem_limit = max(vmem_limit, 16 << 20)

    # ---- BlockSpecs ---------------------------------------------------------
    def tiled(rows):
        # Batch-tiled (rows, bt) slab, indexed by the (parallel) batch-tile id.
        return pl.BlockSpec((rows, bt), lambda i: (0, i))

    def resident(shape):
        # Whole array resident in VMEM, constant block index, single-buffered.
        n = len(shape)
        return pl.BlockSpec(shape, lambda i, _n=n: (0,) * _n,
                            pipeline_mode=pl.Buffered(1))

    out_shapes = (
        jax.ShapeDtypeStruct((layers, pd, pb), out_dtype),   # Z per layer
        jax.ShapeDtypeStruct((layers, pm, pb), out_dtype),   # E per layer
        jax.ShapeDtypeStruct((layers, pm, pb), out_dtype),   # L per layer
    )
    out_specs = [
        pl.BlockSpec((layers, pd, bt), lambda i: (0, 0, i)),
        pl.BlockSpec((layers, pm, bt), lambda i: (0, 0, i)),
        pl.BlockSpec((layers, pm, bt), lambda i: (0, 0, i)),
    ]

    # ---- cost estimate (lets XLA overlap surrounding ops) -------------------
    flops = int(2 * pm * pd * pb * (2 * layers + 1)
                + 12 * layers * (2 * pm + pd) * pb)
    bytes_accessed = int(
        f32b * ((3 * pm + pd) * pb + pm * pd
                + layers * (pd * pm + 5 * pm + pd))
        + outb * layers * (pd + 2 * pm) * pb)
    cost = pl.CostEstimate(flops=flops, transcendentals=0,
                           bytes_accessed=bytes_accessed)

    kernel = functools.partial(_dladmm_kernel, mm_dtype=mm_dtype,
                               unroll=max(1, min(layers, int(unroll))))

    zk, ek, lk = pl.pallas_call(
        kernel,
        out_shape=out_shapes,
        grid_spec=pltpu.PrefetchScalarGridSpec(
            num_scalar_prefetch=0,
            grid=(n_tiles,),
            in_specs=[
                tiled(pm),                     # X
                resident((pm, pd)),            # A
                tiled(pd),                     # Z0
                tiled(pm),                     # E0
                tiled(pm),                     # L0
                resident((layers, pd, pm)),    # fc weights
                resident((layers, pm, 1)),     # beta1
                resident((layers, pm, 1)),     # beta2
                resident((layers, pm, 1)),     # beta3
                resident((layers, pm, 1)),     # ss2
                resident((layers, pd, 1)),     # active_para
                resident((layers, pm, 1)),     # active_para1
            ],
            out_specs=out_specs,
        ),
        compiler_params=pltpu.CompilerParams(
            dimension_semantics=("parallel",),
            vmem_limit_bytes=vmem_limit,
        ),
        cost_estimate=cost,
    )(X, A, Z0, E0, L0, W, beta1, beta2, beta3, ss2, ap, ap1)

    # Slice back to the true (d/m, batch) extents.
    zk = zk[:, :d, :b]
    ek = ek[:, :m, :b]
    lk = lk[:, :m, :b]
    return zk, ek, lk


def dladmm_reference(X, A, Z0, E0, L0, W, beta1, beta2, beta3, ss2, ap, ap1):
    """Pure-JAX reference mirroring the PyTorch forward exactly."""
    def shrink_ref(x, th):
        return jnp.maximum(x - th, 0.0) - jnp.maximum(-x - th, 0.0)

    layers = W.shape[0]
    Zs, Es, Ls = [], [], []
    Z, E, L = Z0, E0, L0
    with jax.default_matmul_precision("highest"):
        T = A @ Z0 + E0 - X
        for k in range(layers):
            var = L + beta1[k] * T
            Z = shrink_ref(Z - W[k] @ var, ap[k])
            az = A @ Z
            vvar = L + beta2[k] * (az + E - X)
            E = shrink_ref(E - ss2[k] * vvar, ap1[k])
            T = az + E - X
            L = L + beta3[k] * T
            Zs.append(Z); Es.append(E); Ls.append(L)
    return jnp.stack(Zs), jnp.stack(Es), jnp.stack(Ls)


if __name__ == "__main__":
    m, d, batch, layers = 32, 16, 8, 3

    key = jax.random.PRNGKey(0)
    k_a, k_z, k_e, k_l, k_x, k_w = jax.random.split(key, 6)

    A = jax.random.normal(k_a, (m, d), dtype=jnp.float32) / jnp.sqrt(m)
    Z0 = jax.random.normal(k_z, (d, batch), dtype=jnp.float32) * 0.1
    E0 = jax.random.normal(k_e, (m, batch), dtype=jnp.float32) * 0.1
    L0 = jax.random.normal(k_l, (m, batch), dtype=jnp.float32) * 0.1
    X = jax.random.normal(k_x, (m, batch), dtype=jnp.float32)

    # fc[k].weight = (A.t() + 0.001 * randn_like(A.t())) * 0.4
    W = ((A.T[None, :, :]
          + 0.001 * jax.random.normal(k_w, (layers, d, m), dtype=jnp.float32))
         * 0.4)

    beta1 = jnp.ones((layers, m, 1), dtype=jnp.float32)
    beta2 = jnp.ones((layers, m, 1), dtype=jnp.float32)
    beta3 = jnp.ones((layers, m, 1), dtype=jnp.float32)
    ss2 = jnp.ones((layers, m, 1), dtype=jnp.float32)
    ap = 0.2 * jnp.ones((layers, d, 1), dtype=jnp.float32)
    ap1 = 0.8 * jnp.ones((layers, m, 1), dtype=jnp.float32)

    Zr, Er, Lr = dladmm_reference(X, A, Z0, E0, L0, W,
                                  beta1, beta2, beta3, ss2, ap, ap1)

    # f32-at-the-MXU path (bit-faithful to the module's numerics).
    Zk, Ek, Lk = dladmm_forward(X, A, Z0, E0, L0, W,
                                beta1, beta2, beta3, ss2, ap, ap1,
                                mm_dtype=jnp.float32)
    jax.block_until_ready((Zk, Ek, Lk))
    np.testing.assert_allclose(np.asarray(Zk), np.asarray(Zr), rtol=1e-3, atol=1e-4)
    np.testing.assert_allclose(np.asarray(Ek), np.asarray(Er), rtol=1e-3, atol=1e-4)
    np.testing.assert_allclose(np.asarray(Lk), np.asarray(Lr), rtol=1e-3, atol=1e-4)

    # bf16-at-the-MXU path (the v6e/v7x perf configuration; f32 accumulate and
    # f32 elementwise math, so only MXU operand rounding differs).
    Zb, Eb, Lb = dladmm_forward(X, A, Z0, E0, L0, W,
                                beta1, beta2, beta3, ss2, ap, ap1,
                                mm_dtype=jnp.bfloat16)
    jax.block_until_ready((Zb, Eb, Lb))
    np.testing.assert_allclose(np.asarray(Zb), np.asarray(Zr), rtol=5e-2, atol=5e-2)
    np.testing.assert_allclose(np.asarray(Eb), np.asarray(Er), rtol=5e-2, atol=5e-2)
    np.testing.assert_allclose(np.asarray(Lb), np.asarray(Lr), rtol=5e-2, atol=5e-2)

    print("KERNEL_OK")
</pallas_src>

<mosaic_0001>
module attributes {stable_mosaic.version = 11 : i64} {
  func.func @_dladmm_kernel(%arg0: i32, %arg1: memref<32x128xf32, #tpu.memory_space<vmem>>, %arg2: memref<32x16xf32, #tpu.memory_space<vmem>>, %arg3: memref<16x128xf32, #tpu.memory_space<vmem>>, %arg4: memref<32x128xf32, #tpu.memory_space<vmem>>, %arg5: memref<32x128xf32, #tpu.memory_space<vmem>>, %arg6: memref<3x16x32xf32, #tpu.memory_space<vmem>>, %arg7: memref<3x32x1xf32, #tpu.memory_space<vmem>>, %arg8: memref<3x32x1xf32, #tpu.memory_space<vmem>>, %arg9: memref<3x32x1xf32, #tpu.memory_space<vmem>>, %arg10: memref<3x32x1xf32, #tpu.memory_space<vmem>>, %arg11: memref<3x16x1xf32, #tpu.memory_space<vmem>>, %arg12: memref<3x32x1xf32, #tpu.memory_space<vmem>>, %arg13: memref<3x16x128xf32, #tpu.memory_space<vmem>>, %arg14: memref<3x32x128xf32, #tpu.memory_space<vmem>>, %arg15: memref<3x32x128xf32, #tpu.memory_space<vmem>>) attributes {dimension_semantics = [#tpu.dimension_semantics<parallel>], iteration_bounds = array<i64: 1>, scalar_prefetch = 0 : i64, scratch_operands = 0 : i64, tpu.core_type = #tpu.core_type<tc>, window_params = [{transform_indices = @transform_0, window_bounds = array<i64: 32, 128>}, {pipeline_mode = #tpu.pipeline_mode<synchronous>, transform_indices = @transform_1, window_bounds = array<i64: 32, 16>}, {transform_indices = @transform_2, window_bounds = array<i64: 16, 128>}, {transform_indices = @transform_3, window_bounds = array<i64: 32, 128>}, {transform_indices = @transform_4, window_bounds = array<i64: 32, 128>}, {pipeline_mode = #tpu.pipeline_mode<synchronous>, transform_indices = @transform_5, window_bounds = array<i64: 3, 16, 32>}, {pipeline_mode = #tpu.pipeline_mode<synchronous>, transform_indices = @transform_6, window_bounds = array<i64: 3, 32, 1>}, {pipeline_mode = #tpu.pipeline_mode<synchronous>, transform_indices = @transform_7, window_bounds = array<i64: 3, 32, 1>}, {pipeline_mode = #tpu.pipeline_mode<synchronous>, transform_indices = @transform_8, window_bounds = array<i64: 3, 32, 1>}, {pipeline_mode = #tpu.pipeline_mode<synchronous>, transform_indices = @transform_9, window_bounds = array<i64: 3, 32, 1>}, {pipeline_mode = #tpu.pipeline_mode<synchronous>, transform_indices = @transform_10, window_bounds = array<i64: 3, 16, 1>}, {pipeline_mode = #tpu.pipeline_mode<synchronous>, transform_indices = @transform_11, window_bounds = array<i64: 3, 32, 1>}, {transform_indices = @transform_12, window_bounds = array<i64: 3, 16, 128>}, {transform_indices = @transform_13, window_bounds = array<i64: 3, 32, 128>}, {transform_indices = @transform_14, window_bounds = array<i64: 3, 32, 128>}]} {
    %c0 = arith.constant 0 : index
    %c0_0 = arith.constant 0 : index
    %0 = vector.load %arg3[%c0, %c0_0] : memref<16x128xf32, #tpu.memory_space<vmem>>, vector<16x128xf32>
    %c0_1 = arith.constant 0 : index
    %c0_2 = arith.constant 0 : index
    %1 = vector.load %arg4[%c0_1, %c0_2] : memref<32x128xf32, #tpu.memory_space<vmem>>, vector<32x128xf32>
    %c0_3 = arith.constant 0 : index
    %c0_4 = arith.constant 0 : index
    %2 = vector.load %arg5[%c0_3, %c0_4] : memref<32x128xf32, #tpu.memory_space<vmem>>, vector<32x128xf32>
    %c0_5 = arith.constant 0 : index
    %c0_6 = arith.constant 0 : index
    %3 = vector.load %arg2[%c0_5, %c0_6] : memref<32x16xf32, #tpu.memory_space<vmem>>, vector<32x16xf32>
    %cst = arith.constant dense<0.000000e+00> : vector<32x128xf32>
    %4 = tpu.matmul %3, %0, %cst {dimension_numbers = #tpu.dot_dimension_numbers<[1], [0], [0], [1], [0, 0, 1, 1], [], []>} : vector<32x16xf32>, vector<16x128xf32>, vector<32x128xf32> -> vector<32x128xf32>
    %5 = arith.addf %4, %1 : vector<32x128xf32>
    %c0_7 = arith.constant 0 : index
    %c0_8 = arith.constant 0 : index
    %6 = vector.load %arg1[%c0_7, %c0_8] : memref<32x128xf32, #tpu.memory_space<vmem>>, vector<32x128xf32>
    %7 = arith.subf %5, %6 : vector<32x128xf32>
    %c0_i32 = arith.constant 0 : i32
    %c0_9 = arith.constant 0 : index
    %c0_10 = arith.constant 0 : index
    %8 = vector.load %arg1[%c0_9, %c0_10] : memref<32x128xf32, #tpu.memory_space<vmem>>, vector<32x128xf32>
    %c0_11 = arith.constant 0 : index
    %c0_12 = arith.constant 0 : index
    %9 = vector.load %arg2[%c0_11, %c0_12] : memref<32x16xf32, #tpu.memory_space<vmem>>, vector<32x16xf32>
    %10 = arith.index_cast %c0_i32 : i32 to index
    %c0_13 = arith.constant 0 : index
    %c0_14 = arith.constant 0 : index
    %11 = vector.load %arg6[%10, %c0_13, %c0_14] : memref<3x16x32xf32, #tpu.memory_space<vmem>>, vector<1x16x32xf32>
    %12 = vector.shape_cast %11 : vector<1x16x32xf32> to vector<16x32xf32>
    %13 = arith.index_cast %c0_i32 : i32 to index
    %c0_15 = arith.constant 0 : index
    %c0_16 = arith.constant 0 : index
    %14 = vector.load %arg7[%13, %c0_15, %c0_16] : memref<3x32x1xf32, #tpu.memory_space<vmem>>, vector<1x32x1xf32>
    %15 = vector.shape_cast %14 : vector<1x32x1xf32> to vector<32x1xf32>
    %16 = arith.index_cast %c0_i32 : i32 to index
    %c0_17 = arith.constant 0 : index
    %c0_18 = arith.constant 0 : index
    %17 = vector.load %arg8[%16, %c0_17, %c0_18] : memref<3x32x1xf32, #tpu.memory_space<vmem>>, vector<1x32x1xf32>
    %18 = vector.shape_cast %17 : vector<1x32x1xf32> to vector<32x1xf32>
    %19 = arith.index_cast %c0_i32 : i32 to index
    %c0_19 = arith.constant 0 : index
    %c0_20 = arith.constant 0 : index
    %20 = vector.load %arg9[%19, %c0_19, %c0_20] : memref<3x32x1xf32, #tpu.memory_space<vmem>>, vector<1x32x1xf32>
    %21 = vector.shape_cast %20 : vector<1x32x1xf32> to vector<32x1xf32>
    %22 = arith.index_cast %c0_i32 : i32 to index
    %c0_21 = arith.constant 0 : index
    %c0_22 = arith.constant 0 : index
    %23 = vector.load %arg10[%22, %c0_21, %c0_22] : memref<3x32x1xf32, #tpu.memory_space<vmem>>, vector<1x32x1xf32>
    %24 = vector.shape_cast %23 : vector<1x32x1xf32> to vector<32x1xf32>
    %25 = arith.index_cast %c0_i32 : i32 to index
    %c0_23 = arith.constant 0 : index
    %c0_24 = arith.constant 0 : index
    %26 = vector.load %arg11[%25, %c0_23, %c0_24] : memref<3x16x1xf32, #tpu.memory_space<vmem>>, vector<1x16x1xf32>
    %27 = vector.shape_cast %26 : vector<1x16x1xf32> to vector<16x1xf32>
    %28 = arith.index_cast %c0_i32 : i32 to index
    %c0_25 = arith.constant 0 : index
    %c0_26 = arith.constant 0 : index
    %29 = vector.load %arg12[%28, %c0_25, %c0_26] : memref<3x32x1xf32, #tpu.memory_space<vmem>>, vector<1x32x1xf32>
    %30 = vector.shape_cast %29 : vector<1x32x1xf32> to vector<32x1xf32>
    %31 = vector.broadcast %15 : vector<32x1xf32> to vector<32x128xf32>
    %32 = arith.mulf %31, %7 : vector<32x128xf32>
    %33 = arith.addf %2, %32 : vector<32x128xf32>
    %cst_27 = arith.constant dense<0.000000e+00> : vector<16x128xf32>
    %34 = tpu.matmul %12, %33, %cst_27 {dimension_numbers = #tpu.dot_dimension_numbers<[1], [0], [0], [1], [0, 0, 1, 1], [], []>} : vector<16x32xf32>, vector<32x128xf32>, vector<16x128xf32> -> vector<16x128xf32>
    %35 = arith.subf %0, %34 : vector<16x128xf32>
    %cst_28 = arith.constant 0.000000e+00 : f32
    %36 = vector.broadcast %cst_28 : f32 to vector<16x1xf32>
    %37 = arith.subf %36, %27 : vector<16x1xf32>
    %38 = vector.broadcast %37 : vector<16x1xf32> to vector<16x128xf32>
    %39 = arith.maximumf %38, %35 : vector<16x128xf32>
    %40 = vector.broadcast %27 : vector<16x1xf32> to vector<16x128xf32>
    %41 = arith.minimumf %40, %39 : vector<16x128xf32>
    %42 = arith.subf %35, %41 : vector<16x128xf32>
    %cst_29 = arith.constant dense<0.000000e+00> : vector<32x128xf32>
    %43 = tpu.matmul %9, %42, %cst_29 {dimension_numbers = #tpu.dot_dimension_numbers<[1], [0], [0], [1], [0, 0, 1, 1], [], []>} : vector<32x16xf32>, vector<16x128xf32>, vector<32x128xf32> -> vector<32x128xf32>
    %44 = arith.subf %43, %8 : vector<32x128xf32>
    %45 = arith.addf %44, %1 : vector<32x128xf32>
    %46 = vector.broadcast %18 : vector<32x1xf32> to vector<32x128xf32>
    %47 = arith.mulf %46, %45 : vector<32x128xf32>
    %48 = arith.addf %2, %47 : vector<32x128xf32>
    %49 = vector.broadcast %24 : vector<32x1xf32> to vector<32x128xf32>
    %50 = arith.mulf %49, %48 : vector<32x128xf32>
    %51 = arith.subf %1, %50 : vector<32x128xf32>
    %cst_30 = arith.constant 0.000000e+00 : f32
    %52 = vector.broadcast %cst_30 : f32 to vector<32x1xf32>
    %53 = arith.subf %52, %30 : vector<32x1xf32>
    %54 = vector.broadcast %53 : vector<32x1xf32> to vector<32x128xf32>
    %55 = arith.maximumf %54, %51 : vector<32x128xf32>
    %56 = vector.broadcast %30 : vector<32x1xf32> to vector<32x128xf32>
    %57 = arith.minimumf %56, %55 : vector<32x128xf32>
    %58 = arith.subf %51, %57 : vector<32x128xf32>
    %59 = arith.addf %44, %58 : vector<32x128xf32>
    %60 = vector.broadcast %21 : vector<32x1xf32> to vector<32x128xf32>
    %61 = arith.mulf %60, %59 : vector<32x128xf32>
    %62 = arith.addf %2, %61 : vector<32x128xf32>
    %63 = arith.index_cast %c0_i32 : i32 to index
    %c0_31 = arith.constant 0 : index
    %c0_32 = arith.constant 0 : index
    %64 = vector.load %arg13[%63, %c0_31, %c0_32] : memref<3x16x128xf32, #tpu.memory_space<vmem>>, vector<1x16x128xf32>
    %65 = vector.shape_cast %64 : vector<1x16x128xf32> to vector<16x128xf32>
    %66 = vector.shape_cast %42 : vector<16x128xf32> to vector<1x16x128xf32>
    tpu.vector_store %arg13[%63, %c0_31, %c0_32], %66 {strides = array<i32>} : memref<3x16x128xf32, #tpu.memory_space<vmem>>, vector<1x16x128xf32>,
    %67 = arith.index_cast %c0_i32 : i32 to index
    %c0_33 = arith.constant 0 : index
    %c0_34 = arith.constant 0 : index
    %68 = vector.load %arg14[%67, %c0_33, %c0_34] : memref<3x32x128xf32, #tpu.memory_space<vmem>>, vector<1x32x128xf32>
    %69 = vector.shape_cast %68 : vector<1x32x128xf32> to vector<32x128xf32>
    %70 = vector.shape_cast %58 : vector<32x128xf32> to vector<1x32x128xf32>
    tpu.vector_store %arg14[%67, %c0_33, %c0_34], %70 {strides = array<i32>} : memref<3x32x128xf32, #tpu.memory_space<vmem>>, vector<1x32x128xf32>,
    %71 = arith.index_cast %c0_i32 : i32 to index
    %c0_35 = arith.constant 0 : index
    %c0_36 = arith.constant 0 : index
    %72 = vector.load %arg15[%71, %c0_35, %c0_36] : memref<3x32x128xf32, #tpu.memory_space<vmem>>, vector<1x32x128xf32>
    %73 = vector.shape_cast %72 : vector<1x32x128xf32> to vector<32x128xf32>
    %74 = vector.shape_cast %62 : vector<32x128xf32> to vector<1x32x128xf32>
    tpu.vector_store %arg15[%71, %c0_35, %c0_36], %74 {strides = array<i32>} : memref<3x32x128xf32, #tpu.memory_space<vmem>>, vector<1x32x128xf32>,
    %c1_i32 = arith.constant 1 : i32
    %c0_37 = arith.constant 0 : index
    %c0_38 = arith.constant 0 : index
    %75 = vector.load %arg1[%c0_37, %c0_38] : memref<32x128xf32, #tpu.memory_space<vmem>>, vector<32x128xf32>
    %c0_39 = arith.constant 0 : index
    %c0_40 = arith.constant 0 : index
    %76 = vector.load %arg2[%c0_39, %c0_40] : memref<32x16xf32, #tpu.memory_space<vmem>>, vector<32x16xf32>
    %77 = arith.index_cast %c1_i32 : i32 to index
    %c0_41 = arith.constant 0 : index
    %c0_42 = arith.constant 0 : index
    %78 = vector.load %arg6[%77, %c0_41, %c0_42] : memref<3x16x32xf32, #tpu.memory_space<vmem>>, vector<1x16x32xf32>
    %79 = vector.shape_cast %78 : vector<1x16x32xf32> to vector<16x32xf32>
    %80 = arith.index_cast %c1_i32 : i32 to index
    %c0_43 = arith.constant 0 : index
    %c0_44 = arith.constant 0 : index
    %81 = vector.load %arg7[%80, %c0_43, %c0_44] : memref<3x32x1xf32, #tpu.memory_space<vmem>>, vector<1x32x1xf32>
    %82 = vector.shape_cast %81 : vector<1x32x1xf32> to vector<32x1xf32>
    %83 = arith.index_cast %c1_i32 : i32 to index
    %c0_45 = arith.constant 0 : index
    %c0_46 = arith.constant 0 : index
    %84 = vector.load %arg8[%83, %c0_45, %c0_46] : memref<3x32x1xf32, #tpu.memory_space<vmem>>, vector<1x32x1xf32>
    %85 = vector.shape_cast %84 : vector<1x32x1xf32> to vector<32x1xf32>
    %86 = arith.index_cast %c1_i32 : i32 to index
    %c0_47 = arith.constant 0 : index
    %c0_48 = arith.constant 0 : index
    %87 = vector.load %arg9[%86, %c0_47, %c0_48] : memref<3x32x1xf32, #tpu.memory_space<vmem>>, vector<1x32x1xf32>
    %88 = vector.shape_cast %87 : vector<1x32x1xf32> to vector<32x1xf32>
    %89 = arith.index_cast %c1_i32 : i32 to index
    %c0_49 = arith.constant 0 : index
    %c0_50 = arith.constant 0 : index
    %90 = vector.load %arg10[%89, %c0_49, %c0_50] : memref<3x32x1xf32, #tpu.memory_space<vmem>>, vector<1x32x1xf32>
    %91 = vector.shape_cast %90 : vector<1x32x1xf32> to vector<32x1xf32>
    %92 = arith.index_cast %c1_i32 : i32 to index
    %c0_51 = arith.constant 0 : index
    %c0_52 = arith.constant 0 : index
    %93 = vector.load %arg11[%92, %c0_51, %c0_52] : memref<3x16x1xf32, #tpu.memory_space<vmem>>, vector<1x16x1xf32>
    %94 = vector.shape_cast %93 : vector<1x16x1xf32> to vector<16x1xf32>
    %95 = arith.index_cast %c1_i32 : i32 to index
    %c0_53 = arith.constant 0 : index
    %c0_54 = arith.constant 0 : index
    %96 = vector.load %arg12[%95, %c0_53, %c0_54] : memref<3x32x1xf32, #tpu.memory_space<vmem>>, vector<1x32x1xf32>
    %97 = vector.shape_cast %96 : vector<1x32x1xf32> to vector<32x1xf32>
    %98 = vector.broadcast %82 : vector<32x1xf32> to vector<32x128xf32>
    %99 = arith.mulf %98, %59 : vector<32x128xf32>
    %100 = arith.addf %62, %99 : vector<32x128xf32>
    %cst_55 = arith.constant dense<0.000000e+00> : vector<16x128xf32>
    %101 = tpu.matmul %79, %100, %cst_55 {dimension_numbers = #tpu.dot_dimension_numbers<[1], [0], [0], [1], [0, 0, 1, 1], [], []>} : vector<16x32xf32>, vector<32x128xf32>, vector<16x128xf32> -> vector<16x128xf32>
    %102 = arith.subf %42, %101 : vector<16x128xf32>
    %cst_56 = arith.constant 0.000000e+00 : f32
    %103 = vector.broadcast %cst_56 : f32 to vector<16x1xf32>
    %104 = arith.subf %103, %94 : vector<16x1xf32>
    %105 = vector.broadcast %104 : vector<16x1xf32> to vector<16x128xf32>
    %106 = arith.maximumf %105, %102 : vector<16x128xf32>
    %107 = vector.broadcast %94 : vector<16x1xf32> to vector<16x128xf32>
    %108 = arith.minimumf %107, %106 : vector<16x128xf32>
    %109 = arith.subf %102, %108 : vector<16x128xf32>
    %cst_57 = arith.constant dense<0.000000e+00> : vector<32x128xf32>
    %110 = tpu.matmul %76, %109, %cst_57 {dimension_numbers = #tpu.dot_dimension_numbers<[1], [0], [0], [1], [0, 0, 1, 1], [], []>} : vector<32x16xf32>, vector<16x128xf32>, vector<32x128xf32> -> vector<32x128xf32>
    %111 = arith.subf %110, %75 : vector<32x128xf32>
    %112 = arith.addf %111, %58 : vector<32x128xf32>
    %113 = vector.broadcast %85 : vector<32x1xf32> to vector<32x128xf32>
    %114 = arith.mulf %113, %112 : vector<32x128xf32>
    %115 = arith.addf %62, %114 : vector<32x128xf32>
    %116 = vector.broadcast %91 : vector<32x1xf32> to vector<32x128xf32>
    %117 = arith.mulf %116, %115 : vector<32x128xf32>
    %118 = arith.subf %58, %117 : vector<32x128xf32>
    %cst_58 = arith.constant 0.000000e+00 : f32
    %119 = vector.broadcast %cst_58 : f32 to vector<32x1xf32>
    %120 = arith.subf %119, %97 : vector<32x1xf32>
    %121 = vector.broadcast %120 : vector<32x1xf32> to vector<32x128xf32>
    %122 = arith.maximumf %121, %118 : vector<32x128xf32>
    %123 = vector.broadcast %97 : vector<32x1xf32> to vector<32x128xf32>
    %124 = arith.minimumf %123, %122 : vector<32x128xf32>
    %125 = arith.subf %118, %124 : vector<32x128xf32>
    %126 = arith.addf %111, %125 : vector<32x128xf32>
    %127 = vector.broadcast %88 : vector<32x1xf32> to vector<32x128xf32>
    %128 = arith.mulf %127, %126 : vector<32x128xf32>
    %129 = arith.addf %62, %128 : vector<32x128xf32>
    %130 = arith.index_cast %c1_i32 : i32 to index
    %c0_59 = arith.constant 0 : index
    %c0_60 = arith.constant 0 : index
    %131 = vector.load %arg13[%130, %c0_59, %c0_60] : memref<3x16x128xf32, #tpu.memory_space<vmem>>, vector<1x16x128xf32>
    %132 = vector.shape_cast %131 : vector<1x16x128xf32> to vector<16x128xf32>
    %133 = vector.shape_cast %109 : vector<16x128xf32> to vector<1x16x128xf32>
    tpu.vector_store %arg13[%130, %c0_59, %c0_60], %133 {strides = array<i32>} : memref<3x16x128xf32, #tpu.memory_space<vmem>>, vector<1x16x128xf32>,
    %134 = arith.index_cast %c1_i32 : i32 to index
    %c0_61 = arith.constant 0 : index
    %c0_62 = arith.constant 0 : index
    %135 = vector.load %arg14[%134, %c0_61, %c0_62] : memref<3x32x128xf32, #tpu.memory_space<vmem>>, vector<1x32x128xf32>
    %136 = vector.shape_cast %135 : vector<1x32x128xf32> to vector<32x128xf32>
    %137 = vector.shape_cast %125 : vector<32x128xf32> to vector<1x32x128xf32>
    tpu.vector_store %arg14[%134, %c0_61, %c0_62], %137 {strides = array<i32>} : memref<3x32x128xf32, #tpu.memory_space<vmem>>, vector<1x32x128xf32>,
    %138 = arith.index_cast %c1_i32 : i32 to index
    %c0_63 = arith.constant 0 : index
    %c0_64 = arith.constant 0 : index
    %139 = vector.load %arg15[%138, %c0_63, %c0_64] : memref<3x32x128xf32, #tpu.memory_space<vmem>>, vector<1x32x128xf32>
    %140 = vector.shape_cast %139 : vector<1x32x128xf32> to vector<32x128xf32>
    %141 = vector.shape_cast %129 : vector<32x128xf32> to vector<1x32x128xf32>
    tpu.vector_store %arg15[%138, %c0_63, %c0_64], %141 {strides = array<i32>} : memref<3x32x128xf32, #tpu.memory_space<vmem>>, vector<1x32x128xf32>,
    %c2_i32 = arith.constant 2 : i32
    %c0_65 = arith.constant 0 : index
    %c0_66 = arith.constant 0 : index
    %142 = vector.load %arg1[%c0_65, %c0_66] : memref<32x128xf32, #tpu.memory_space<vmem>>, vector<32x128xf32>
    %c0_67 = arith.constant 0 : index
    %c0_68 = arith.constant 0 : index
    %143 = vector.load %arg2[%c0_67, %c0_68] : memref<32x16xf32, #tpu.memory_space<vmem>>, vector<32x16xf32>
    %144 = arith.index_cast %c2_i32 : i32 to index
    %c0_69 = arith.constant 0 : index
    %c0_70 = arith.constant 0 : index
    %145 = vector.load %arg6[%144, %c0_69, %c0_70] : memref<3x16x32xf32, #tpu.memory_space<vmem>>, vector<1x16x32xf32>
    %146 = vector.shape_cast %145 : vector<1x16x32xf32> to vector<16x32xf32>
    %147 = arith.index_cast %c2_i32 : i32 to index
    %c0_71 = arith.constant 0 : index
    %c0_72 = arith.constant 0 : index
    %148 = vector.load %arg7[%147, %c0_71, %c0_72] : memref<3x32x1xf32, #tpu.memory_space<vmem>>, vector<1x32x1xf32>
    %149 = vector.shape_cast %148 : vector<1x32x1xf32> to vector<32x1xf32>
    %150 = arith.index_cast %c2_i32 : i32 to index
    %c0_73 = arith.constant 0 : index
    %c0_74 = arith.constant 0 : index
    %151 = vector.load %arg8[%150, %c0_73, %c0_74] : memref<3x32x1xf32, #tpu.memory_space<vmem>>, vector<1x32x1xf32>
    %152 = vector.shape_cast %151 : vector<1x32x1xf32> to vector<32x1xf32>
    %153 = arith.index_cast %c2_i32 : i32 to index
    %c0_75 = arith.constant 0 : index
    %c0_76 = arith.constant 0 : index
    %154 = vector.load %arg9[%153, %c0_75, %c0_76] : memref<3x32x1xf32, #tpu.memory_space<vmem>>, vector<1x32x1xf32>
    %155 = vector.shape_cast %154 : vector<1x32x1xf32> to vector<32x1xf32>
    %156 = arith.index_cast %c2_i32 : i32 to index
    %c0_77 = arith.constant 0 : index
    %c0_78 = arith.constant 0 : index
    %157 = vector.load %arg10[%156, %c0_77, %c0_78] : memref<3x32x1xf32, #tpu.memory_space<vmem>>, vector<1x32x1xf32>
    %158 = vector.shape_cast %157 : vector<1x32x1xf32> to vector<32x1xf32>
    %159 = arith.index_cast %c2_i32 : i32 to index
    %c0_79 = arith.constant 0 : index
    %c0_80 = arith.constant 0 : index
    %160 = vector.load %arg11[%159, %c0_79, %c0_80] : memref<3x16x1xf32, #tpu.memory_space<vmem>>, vector<1x16x1xf32>
    %161 = vector.shape_cast %160 : vector<1x16x1xf32> to vector<16x1xf32>
    %162 = arith.index_cast %c2_i32 : i32 to index
    %c0_81 = arith.constant 0 : index
    %c0_82 = arith.constant 0 : index
    %163 = vector.load %arg12[%162, %c0_81, %c0_82] : memref<3x32x1xf32, #tpu.memory_space<vmem>>, vector<1x32x1xf32>
    %164 = vector.shape_cast %163 : vector<1x32x1xf32> to vector<32x1xf32>
    %165 = vector.broadcast %149 : vector<32x1xf32> to vector<32x128xf32>
    %166 = arith.mulf %165, %126 : vector<32x128xf32>
    %167 = arith.addf %129, %166 : vector<32x128xf32>
    %cst_83 = arith.constant dense<0.000000e+00> : vector<16x128xf32>
    %168 = tpu.matmul %146, %167, %cst_83 {dimension_numbers = #tpu.dot_dimension_numbers<[1], [0], [0], [1], [0, 0, 1, 1], [], []>} : vector<16x32xf32>, vector<32x128xf32>, vector<16x128xf32> -> vector<16x128xf32>
    %169 = arith.subf %109, %168 : vector<16x128xf32>
    %cst_84 = arith.constant 0.000000e+00 : f32
    %170 = vector.broadcast %cst_84 : f32 to vector<16x1xf32>
    %171 = arith.subf %170, %161 : vector<16x1xf32>
    %172 = vector.broadcast %171 : vector<16x1xf32> to vector<16x128xf32>
    %173 = arith.maximumf %172, %169 : vector<16x128xf32>
    %174 = vector.broadcast %161 : vector<16x1xf32> to vector<16x128xf32>
    %175 = arith.minimumf %174, %173 : vector<16x128xf32>
    %176 = arith.subf %169, %175 : vector<16x128xf32>
    %cst_85 = arith.constant dense<0.000000e+00> : vector<32x128xf32>
    %177 = tpu.matmul %143, %176, %cst_85 {dimension_numbers = #tpu.dot_dimension_numbers<[1], [0], [0], [1], [0, 0, 1, 1], [], []>} : vector<32x16xf32>, vector<16x128xf32>, vector<32x128xf32> -> vector<32x128xf32>
    %178 = arith.subf %177, %142 : vector<32x128xf32>
    %179 = arith.addf %178, %125 : vector<32x128xf32>
    %180 = vector.broadcast %152 : vector<32x1xf32> to vector<32x128xf32>
    %181 = arith.mulf %180, %179 : vector<32x128xf32>
    %182 = arith.addf %129, %181 : vector<32x128xf32>
    %183 = vector.broadcast %158 : vector<32x1xf32> to vector<32x128xf32>
    %184 = arith.mulf %183, %182 : vector<32x128xf32>
    %185 = arith.subf %125, %184 : vector<32x128xf32>
    %cst_86 = arith.constant 0.000000e+00 : f32
    %186 = vector.broadcast %cst_86 : f32 to vector<32x1xf32>
    %187 = arith.subf %186, %164 : vector<32x1xf32>
    %188 = vector.broadcast %187 : vector<32x1xf32> to vector<32x128xf32>
    %189 = arith.maximumf %188, %185 : vector<32x128xf32>
    %190 = vector.broadcast %164 : vector<32x1xf32> to vector<32x128xf32>
    %191 = arith.minimumf %190, %189 : vector<32x128xf32>
    %192 = arith.subf %185, %191 : vector<32x128xf32>
    %193 = arith.addf %178, %192 : vector<32x128xf32>
    %194 = vector.broadcast %155 : vector<32x1xf32> to vector<32x128xf32>
    %195 = arith.mulf %194, %193 : vector<32x128xf32>
    %196 = arith.addf %129, %195 : vector<32x128xf32>
    %197 = arith.index_cast %c2_i32 : i32 to index
    %c0_87 = arith.constant 0 : index
    %c0_88 = arith.constant 0 : index
    %198 = vector.load %arg13[%197, %c0_87, %c0_88] : memref<3x16x128xf32, #tpu.memory_space<vmem>>, vector<1x16x128xf32>
    %199 = vector.shape_cast %198 : vector<1x16x128xf32> to vector<16x128xf32>
    %200 = vector.shape_cast %176 : vector<16x128xf32> to vector<1x16x128xf32>
    tpu.vector_store %arg13[%197, %c0_87, %c0_88], %200 {strides = array<i32>} : memref<3x16x128xf32, #tpu.memory_space<vmem>>, vector<1x16x128xf32>,
    %201 = arith.index_cast %c2_i32 : i32 to index
    %c0_89 = arith.constant 0 : index
    %c0_90 = arith.constant 0 : index
    %202 = vector.load %arg14[%201, %c0_89, %c0_90] : memref<3x32x128xf32, #tpu.memory_space<vmem>>, vector<1x32x128xf32>
    %203 = vector.shape_cast %202 : vector<1x32x128xf32> to vector<32x128xf32>
    %204 = vector.shape_cast %192 : vector<32x128xf32> to vector<1x32x128xf32>
    tpu.vector_store %arg14[%201, %c0_89, %c0_90], %204 {strides = array<i32>} : memref<3x32x128xf32, #tpu.memory_space<vmem>>, vector<1x32x128xf32>,
    %205 = arith.index_cast %c2_i32 : i32 to index
    %c0_91 = arith.constant 0 : index
    %c0_92 = arith.constant 0 : index
    %206 = vector.load %arg15[%205, %c0_91, %c0_92] : memref<3x32x128xf32, #tpu.memory_space<vmem>>, vector<1x32x128xf32>
    %207 = vector.shape_cast %206 : vector<1x32x128xf32> to vector<32x128xf32>
    %208 = vector.shape_cast %196 : vector<32x128xf32> to vector<1x32x128xf32>
    tpu.vector_store %arg15[%205, %c0_91, %c0_92], %208 {strides = array<i32>} : memref<3x32x128xf32, #tpu.memory_space<vmem>>, vector<1x32x128xf32>,
    %c3_i32 = arith.constant 3 : i32
    return
  }
  func.func @transform_0(%arg0: i32) -> (i32, i32) {
    %c0_i32 = arith.constant 0 : i32
    %c0_i32_0 = arith.constant 0 : i32
    return %c0_i32, %arg0 : i32, i32
  }
  func.func @transform_1(%arg0: i32) -> (i32, i32) {
    %c0_i32 = arith.constant 0 : i32
    %c0_i32_0 = arith.constant 0 : i32
    %c0_i32_1 = arith.constant 0 : i32
    return %c0_i32, %c0_i32_0 : i32, i32
  }
  func.func @transform_2(%arg0: i32) -> (i32, i32) {
    %c0_i32 = arith.constant 0 : i32
    %c0_i32_0 = arith.constant 0 : i32
    return %c0_i32, %arg0 : i32, i32
  }
  func.func @transform_3(%arg0: i32) -> (i32, i32) {
    %c0_i32 = arith.constant 0 : i32
    %c0_i32_0 = arith.constant 0 : i32
    return %c0_i32, %arg0 : i32, i32
  }
  func.func @transform_4(%arg0: i32) -> (i32, i32) {
    %c0_i32 = arith.constant 0 : i32
    %c0_i32_0 = arith.constant 0 : i32
    return %c0_i32, %arg0 : i32, i32
  }
  func.func @transform_5(%arg0: i32) -> (i32, i32, i32) {
    %c0_i32 = arith.constant 0 : i32
    %c0_i32_0 = arith.constant 0 : i32
    %c0_i32_1 = arith.constant 0 : i32
    %c0_i32_2 = arith.constant 0 : i32
    return %c0_i32, %c0_i32_0, %c0_i32_1 : i32, i32, i32
  }
  func.func @transform_6(%arg0: i32) -> (i32, i32, i32) {
    %c0_i32 = arith.constant 0 : i32
    %c0_i32_0 = arith.constant 0 : i32
    %c0_i32_1 = arith.constant 0 : i32
    %c0_i32_2 = arith.constant 0 : i32
    return %c0_i32, %c0_i32_0, %c0_i32_1 : i32, i32, i32
  }
  func.func @transform_7(%arg0: i32) -> (i32, i32, i32) {
    %c0_i32 = arith.constant 0 : i32
    %c0_i32_0 = arith.constant 0 : i32
    %c0_i32_1 = arith.constant 0 : i32
    %c0_i32_2 = arith.constant 0 : i32
    return %c0_i32, %c0_i32_0, %c0_i32_1 : i32, i32, i32
  }
  func.func @transform_8(%arg0: i32) -> (i32, i32, i32) {
    %c0_i32 = arith.constant 0 : i32
    %c0_i32_0 = arith.constant 0 : i32
    %c0_i32_1 = arith.constant 0 : i32
    %c0_i32_2 = arith.constant 0 : i32
    return %c0_i32, %c0_i32_0, %c0_i32_1 : i32, i32, i32
  }
  func.func @transform_9(%arg0: i32) -> (i32, i32, i32) {
    %c0_i32 = arith.constant 0 : i32
    %c0_i32_0 = arith.constant 0 : i32
    %c0_i32_1 = arith.constant 0 : i32
    %c0_i32_2 = arith.constant 0 : i32
    return %c0_i32, %c0_i32_0, %c0_i32_1 : i32, i32, i32
  }
  func.func @transform_10(%arg0: i32) -> (i32, i32, i32) {
    %c0_i32 = arith.constant 0 : i32
    %c0_i32_0 = arith.constant 0 : i32
    %c0_i32_1 = arith.constant 0 : i32
    %c0_i32_2 = arith.constant 0 : i32
    return %c0_i32, %c0_i32_0, %c0_i32_1 : i32, i32, i32
  }
  func.func @transform_11(%arg0: i32) -> (i32, i32, i32) {
    %c0_i32 = arith.constant 0 : i32
    %c0_i32_0 = arith.constant 0 : i32
    %c0_i32_1 = arith.constant 0 : i32
    %c0_i32_2 = arith.constant 0 : i32
    return %c0_i32, %c0_i32_0, %c0_i32_1 : i32, i32, i32
  }
  func.func @transform_12(%arg0: i32) -> (i32, i32, i32) {
    %c0_i32 = arith.constant 0 : i32
    %c0_i32_0 = arith.constant 0 : i32
    %c0_i32_1 = arith.constant 0 : i32
    return %c0_i32, %c0_i32_0, %arg0 : i32, i32, i32
  }
  func.func @transform_13(%arg0: i32) -> (i32, i32, i32) {
    %c0_i32 = arith.constant 0 : i32
    %c0_i32_0 = arith.constant 0 : i32
    %c0_i32_1 = arith.constant 0 : i32
    return %c0_i32, %c0_i32_0, %arg0 : i32, i32, i32
  }
  func.func @transform_14(%arg0: i32) -> (i32, i32, i32) {
    %c0_i32 = arith.constant 0 : i32
    %c0_i32_0 = arith.constant 0 : i32
    %c0_i32_1 = arith.constant 0 : i32
    return %c0_i32, %c0_i32_0, %arg0 : i32, i32, i32
  }
}

</mosaic_0001>

<bundles_post_ra>
// kernel: tpu_custom_call.1
= control target key start
LH: loop header
LB: loop body
LE: loop exit
PB: predicated region body
PF: predicated region fallthrough
CT: control target
= control target key end

     0   :  { %20 = vsyncpa [#allocation3], 0  ;;  %vm60_vm0 = vcmask 130048   ;;  %v1807_v3 = vmov 0   ;;  %s2439_s0 = inlined_call_operand.vmem [shape: f32[32,128], index: 0, kind: input, shape index: {}]   ;;  %s2440_s1 = inlined_call_operand.vmem [shape: f32[32,16], index: 1, kind: input, shape index: {}]   ;;  %s2441_s2 = inlined_call_operand.vmem [shape: f32[16,128], index: 2, kind: input, shape index: {}]   ;;  %s2442_s3 = inlined_call_operand.vmem [shape: f32[32,128], index: 3, kind: input, shape index: {}]   ;;  %s2443_s4 = inlined_call_operand.vmem [shape: f32[32,128], index: 4, kind: input, shape index: {}]   ;;  %s2444_s5 = inlined_call_operand.vmem [shape: f32[3,16,32], index: 5, kind: input, shape index: {}]   ;;  %s2445_s6 = inlined_call_operand.vmem [shape: f32[3,32,1], index: 6, kind: input, shape index: {}]   ;;  %s2446_s7 = inlined_call_operand.vmem [shape: f32[3,32,1], index: 7, kind: input, shape index: {}]   ;;  %s2447_s8 = inlined_call_operand.vmem [shape: f32[3,32,1], index: 8, kind: input, shape index: {}]   ;;  %s2448_s9 = inlined_call_operand.vmem [shape: f32[3,32,1], index: 9, kind: input, shape index: {}]   ;;  %s2449_s10 = inlined_call_operand.vmem [shape: f32[3,16,1], index: 10, kind: input, shape index: {}]   ;;  %s2450_s11 = inlined_call_operand.vmem [shape: f32[3,32,1], index: 11, kind: input, shape index: {}]   ;;  %s2451_s12 = inlined_call_operand.hbm [shape: f32[3,16,128], index: 12, kind: output, shape index: {0}]   ;;  %s2452_s13 = inlined_call_operand.hbm [shape: f32[3,32,128], index: 13, kind: output, shape index: {1}]   ;;  %s2453_s14 = inlined_call_operand.hbm [shape: f32[3,32,128], index: 14, kind: output, shape index: {2}]  }
   0x1   :  { %v170_v0 = vld [vmem:[%s2445_s6 + $0x10] sm:$0xff]  ;;  %v168_v1 = vld [vmem:[%s2445_s6] sm:$0xff]  ;;  %1736 = vset.pattern.permute.xlu1 %v1807_v3  ;;  %1735 = vset.pattern.permute.xlu0 %v1807_v3  ;;  %v1902_v4 = vld [vmem:[%s2441_s2 + $0x8] sm:$0xff] }
   0x2   :  { %v1897_v2 = vld [vmem:[%s2441_s2] sm:$0xff]  ;;  %202 = vperm.xlu1 %1736, %v170_v0   ;;  %192 = vperm.xlu0 %1735, %v168_v1   ;;  %v171_v6 = vld [vmem:[%s2445_s6 + $0x18] sm:$0xff]  ;;  %v169_v8 = vld [vmem:[%s2445_s6 + $0x8] sm:$0xff] }
   0x3   :  { %v1689_v5 = vpack.c.bf16 %v1902_v4, %v1897_v2  ;;  %v1912_v7 = vld [vmem:[%s2440_s1] sm:$0xff]  ;;  %v185_v9 = vld [vmem:[%s2449_s10 + $0x8] sm:$0xff]  ;;  %v1935_v14 = vld [vmem:[%s2440_s1 + $0x10] sm:$0xff] }
   0x4   :  { %1620 = vmatprep.mubr.msk.f32.mxu1 %vm60_vm0, %v1912_v7  ;;  %v184_v10 = vld [vmem:[%s2449_s10] sm:$0xff]  ;;  %1641 = vmatprep.mubr.msk.f32.mxu0 %vm60_vm0, %v1912_v7  ;;  %v1930_v11 = vld [vmem:[%s2440_s1 + $0x8] sm:$0xff]  ;;  %v303_v12 = vsub.f32 0.0, %v185_v9  ;;  %v1944_v15 = vld [vmem:[%s2440_s1 + $0x18] sm:$0xff] }
   0x5   :  { %1690 = vmatprep.subr.bf16.mxu1 %v1689_v5  ;;  %v302_v13 = vsub.f32 0.0, %v184_v10  ;;  %v173_v16 = vld [vmem:[%s2446_s7 + $0x8] sm:$0xff]  ;;  %v172_v17 = vld [vmem:[%s2446_s7] sm:$0xff]  ;;  %v175_v18 = vld [vmem:[%s2446_s7 + $0x18] sm:$0xff] }
   0x6   :  { %1692 = vmatpush3.bf16.msra.mxu1 %v1689_v5  ;;  %207 = vperm.xlu1 %1736, %v171_v6   ;;  %v174_v19 = vld [vmem:[%s2446_s7 + $0x10] sm:$0xff] }
   0x7   :  { %197 = vperm.xlu0 %1735, %v169_v8  }
   0x9   :  { %1621 = vmatmul.mubr.msk.f32.vlgmr.msra.gmra.mrb[0].mxu1 %vm60_vm0, %v1930_v11 }
   0xa   :  { %1623 = vmatprep.mubr.msk.f32.mxu1 %vm60_vm0, %v1935_v14  ;;  %311 = vperm.xlu1 %1736, %v303_v12  }
   0xb   :  { %306 = vperm.xlu0 %1735, %v302_v13  }
   0xd   :  { %1624 = vmatmul.mubr.msk.f32.gmra.mrb[2].mxu1 %vm60_vm0, %v1944_v15 }
   0xe   :  { %323 = vperm.xlu1 %1736, %v185_v9  }
   0xf   :  { %318 = vperm.xlu0 %1735, %v184_v10  }
  0x12   :  { %430 = vperm.xlu1 %1736, %v173_v16  }
  0x13   :  { %425 = vperm.xlu0 %1735, %v172_v17  }
  0x16   :  { %440 = vperm.xlu1 %1736, %v175_v18  }
  0x17   :  { %435 = vperm.xlu0 %1735, %v174_v19  }
  0x18   :  { %21 = vsyncpa [#allocation5], 0  ;;  %v181_v20 = vld [vmem:[%s2448_s9 + $0x8] sm:$0xff]  ;;  %v180_v21 = vld [vmem:[%s2448_s9] sm:$0xff]  ;;  %vm218_vm1 = vcmask 261120  }
  0x19   :  { %v183_v22 = vld [vmem:[%s2448_s9 + $0x18] sm:$0xff]  ;;  %v182_v23 = vld [vmem:[%s2448_s9 + $0x10] sm:$0xff]  ;;  %v187_v24 = vld [vmem:[%s2450_s11 + $0x8] sm:$0xff] }
  0x1a   :  { %458 = vperm.xlu1 %1736, %v181_v20   ;;  %v186_v25 = vld [vmem:[%s2450_s11] sm:$0xff]  ;;  %v480_v26 = vsub.f32 0.0, %v187_v24  ;;  %v189_v28 = vld [vmem:[%s2450_s11 + $0x18] sm:$0xff]  ;;  %v188_v29 = vld [vmem:[%s2450_s11 + $0x10] sm:$0xff] }
  0x1b   :  { %453 = vperm.xlu0 %1735, %v180_v21   ;;  %v479_v27 = vsub.f32 0.0, %v186_v25  ;;  %v482_v30 = vsub.f32 0.0, %v189_v28  ;;  %v481_v31 = vsub.f32 0.0, %v188_v29  ;;  %v177_v32 = vld [vmem:[%s2447_s8 + $0x8] sm:$0xff]  ;;  %v176_v33 = vld [vmem:[%s2447_s8] sm:$0xff]  ;;  %v179_v36 = vld [vmem:[%s2447_s8 + $0x18] sm:$0xff] }
  0x1c   :  { %v1517_v34 = vld [vmem:[%s2445_s6 + $0x28] sm:$0xff]  ;;  %v1516_v35 = vld [vmem:[%s2445_s6 + $0x20] sm:$0xff]  ;;  %v178_v37 = vld [vmem:[%s2447_s8 + $0x10] sm:$0xff] }
  0x1d   :  { %v1519_v38 = vld [vmem:[%s2445_s6 + $0x38] sm:$0xff]  ;;  %v1518_v39 = vld [vmem:[%s2445_s6 + $0x30] sm:$0xff]  ;;  %v1521_v44 = vld [vmem:[%s2446_s7 + $0x28] sm:$0xff] }
  0x1e   :  { %468 = vperm.xlu1 %1736, %v183_v22   ;;  %v1533_v40 = vld [vmem:[%s2449_s10 + $0x18] sm:$0xff]  ;;  %v1532_v41 = vld [vmem:[%s2449_s10 + $0x10] sm:$0xff]  ;;  %v1520_v45 = vld [vmem:[%s2446_s7 + $0x20] sm:$0xff] }
  0x1f   :  { %463 = vperm.xlu0 %1735, %v182_v23   ;;  %v728_v42 = vsub.f32 0.0, %v1533_v40  ;;  %v727_v43 = vsub.f32 0.0, %v1532_v41  ;;  %v1523_v46 = vld [vmem:[%s2446_s7 + $0x38] sm:$0xff]  ;;  %v1522_v47 = vld [vmem:[%s2446_s7 + $0x30] sm:$0xff]  ;;  %v1529_v48 = vld [vmem:[%s2448_s9 + $0x28] sm:$0xff] }
  0x20   :  { %v1528_v49 = vld [vmem:[%s2448_s9 + $0x20] sm:$0xff]  ;;  %v1531_v50 = vld [vmem:[%s2448_s9 + $0x38] sm:$0xff]  ;;  %v1530_v51 = vld [vmem:[%s2448_s9 + $0x30] sm:$0xff] }
  0x21   :  { %v1535_v52 = vld [vmem:[%s2450_s11 + $0x28] sm:$0xff]  ;;  %v1534_v53 = vld [vmem:[%s2450_s11 + $0x20] sm:$0xff]  ;;  %v1537_v56 = vld [vmem:[%s2450_s11 + $0x38] sm:$0xff] }
  0x22   :  { %490 = vperm.xlu1 %1736, %v480_v26   ;;  %v917_v54 = vsub.f32 0.0, %v1535_v52  ;;  %v916_v55 = vsub.f32 0.0, %v1534_v53  ;;  %v1536_v57 = vld [vmem:[%s2450_s11 + $0x30] sm:$0xff]  ;;  %v919_v58 = vsub.f32 0.0, %v1537_v56  ;;  %v1525_v60 = vld [vmem:[%s2447_s8 + $0x28] sm:$0xff]  ;;  %v1524_v61 = vld [vmem:[%s2447_s8 + $0x20] sm:$0xff] }
  0x23   :  { %485 = vperm.xlu0 %1735, %v479_v27   ;;  %v918_v59 = vsub.f32 0.0, %v1536_v57  ;;  %v1547_v62 = vld [vmem:[%s2445_s6 + $0x48] sm:$0xff]  ;;  %v1546_v63 = vld [vmem:[%s2445_s6 + $0x40] sm:$0xff]  ;;  %v1527_v1 = vld [vmem:[%s2447_s8 + $0x38] sm:$0xff] }
  0x24   :  { %v166_v0 = vld [vmem:[%s2444_s5] sm:$0xff]  ;;  %v1526_v3 = vld [vmem:[%s2447_s8 + $0x30] sm:$0xff]  ;;  %v1549_v5 = vld [vmem:[%s2445_s6 + $0x58] sm:$0xff] }
  0x25   :  { %1634 = vmatprep.mubr.msk.f32.mxu1 %vm218_vm1, %v166_v0  ;;  %v1548_v6 = vld [vmem:[%s2445_s6 + $0x50] sm:$0xff]  ;;  %v1563_v8 = vld [vmem:[%s2449_s10 + $0x28] sm:$0xff]  ;;  %v1562_v9 = vld [vmem:[%s2449_s10 + $0x20] sm:$0xff] }
  0x26   :  { %514 = vperm.xlu1 %1736, %v187_v24   ;;  %v1168_v10 = vsub.f32 0.0, %v1563_v8  ;;  %v1167_v12 = vsub.f32 0.0, %v1562_v9  ;;  %v1551_v13 = vld [vmem:[%s2446_s7 + $0x48] sm:$0xff]  ;;  %v1550_v16 = vld [vmem:[%s2446_s7 + $0x40] sm:$0xff]  ;;  %v1553_v17 = vld [vmem:[%s2446_s7 + $0x58] sm:$0xff] }
  0x27   :  { %509 = vperm.xlu0 %1735, %v186_v25   ;;  %v1552_v18 = vld [vmem:[%s2446_s7 + $0x50] sm:$0xff]  ;;  %v1559_v19 = vld [vmem:[%s2448_s9 + $0x48] sm:$0xff]  ;;  %v1558_v20 = vld [vmem:[%s2448_s9 + $0x40] sm:$0xff] }
  0x28   :  { %v1561_v21 = vld [vmem:[%s2448_s9 + $0x58] sm:$0xff]  ;;  %v1560_v22 = vld [vmem:[%s2448_s9 + $0x50] sm:$0xff]  ;;  %v1565_v23 = vld [vmem:[%s2450_s11 + $0x48] sm:$0xff] }
  0x29   :  { %v1564_v24 = vld [vmem:[%s2450_s11 + $0x40] sm:$0xff]  ;;  %v1357_v25 = vsub.f32 0.0, %v1565_v23  ;;  %v1567_v27 = vld [vmem:[%s2450_s11 + $0x58] sm:$0xff] }
  0x2a   :  { %500 = vperm.xlu1 %1736, %v482_v30   ;;  %v1356_v26 = vsub.f32 0.0, %v1564_v24 }
  0x2b   :  { %495 = vperm.xlu0 %1735, %v481_v31   ;;  %v1555_v31 = vld [vmem:[%s2447_s8 + $0x48] sm:$0xff] }
  0x2e   :  { %524 = vperm.xlu1 %1736, %v189_v28   ;;  %v1566_v28 = vld [vmem:[%s2450_s11 + $0x50] sm:$0xff] }
  0x2f   :  { %519 = vperm.xlu0 %1735, %v188_v29   ;;  %v1359_v29 = vsub.f32 0.0, %v1567_v27  ;;  %v1358_v30 = vsub.f32 0.0, %v1566_v28 }
  0x32   :  { %546 = vperm.xlu1 %1736, %v177_v32   ;;  %v1554_v32 = vld [vmem:[%s2447_s8 + $0x40] sm:$0xff] }
  0x33   :  { %541 = vperm.xlu0 %1735, %v176_v33   ;;  %v1557_v33 = vld [vmem:[%s2447_s8 + $0x58] sm:$0xff] }
  0x36   :  { %623 = vperm.xlu1 %1736, %v1517_v34   ;;  %v1556_v34 = vld [vmem:[%s2447_s8 + $0x50] sm:$0xff] }
  0x37   :  { %618 = vperm.xlu0 %1735, %v1516_v35  }
  0x3a   :  { %556 = vperm.xlu1 %1736, %v179_v36   ;;  %v2135_v36 = vld [vmem:[%s2442_s3 + $0x8] sm:$0xff] }
  0x3b   :  { %551 = vperm.xlu0 %1735, %v178_v37   ;;  %v2140_v37 = vld [vmem:[%s2442_s3] sm:$0xff] }
  0x3e   :  { %633 = vperm.xlu1 %1736, %v1519_v38  }
  0x3f   :  { %628 = vperm.xlu0 %1735, %v1518_v39   ;;  %v2145_v39 = vld [vmem:[%s2439_s0 + $0x8] sm:$0xff] }
  0x42   :  { %736 = vperm.xlu1 %1736, %v728_v42   ;;  %v2151_v42 = vld [vmem:[%s2439_s0] sm:$0xff] }
  0x43   :  { %731 = vperm.xlu0 %1735, %v727_v43  }
  0x46   :  { %748 = vperm.xlu1 %1736, %v1533_v40  }
  0x47   :  { %743 = vperm.xlu0 %1735, %v1532_v41  }
  0x4a   :  { %867 = vperm.xlu1 %1736, %v1521_v44  }
  0x4b   :  { %862 = vperm.xlu0 %1735, %v1520_v45   ;;  %v2157_v45 = vld [vmem:[%s2442_s3 + $0x18] sm:$0xff] }
  0x4e   :  { %877 = vperm.xlu1 %1736, %v1523_v46  }
  0x4f   :  { %872 = vperm.xlu0 %1735, %v1522_v47   ;;  %v2163_v47 = vld [vmem:[%s2442_s3 + $0x10] sm:$0xff] }
  0x52   :  { %895 = vperm.xlu1 %1736, %v1529_v48  }
  0x53   :  { %890 = vperm.xlu0 %1735, %v1528_v49  }
  0x56   :  { %905 = vperm.xlu1 %1736, %v1531_v50  }
  0x57   :  { %900 = vperm.xlu0 %1735, %v1530_v51   ;;  %v2169_v51 = vld [vmem:[%s2439_s0 + $0x18] sm:$0xff] }
  0x5a   :  { %927 = vperm.xlu1 %1736, %v917_v54  }
  0x5b   :  { %922 = vperm.xlu0 %1735, %v916_v55  }
  0x5e   :  { %951 = vperm.xlu1 %1736, %v1535_v52   ;;  %v2174_v52 = vld [vmem:[%s2443_s4 + $0x8] sm:$0xff] }
  0x5f   :  { %946 = vperm.xlu0 %1735, %v1534_v53  }
  0x62   :  { %937 = vperm.xlu1 %1736, %v919_v58  }
  0x63   :  { %932 = vperm.xlu0 %1735, %v918_v59  }
  0x66   :  { %961 = vperm.xlu1 %1736, %v1537_v56   ;;  %v2180_v56 = vld [vmem:[%s2439_s0 + $0x10] sm:$0xff] }
  0x67   :  { %956 = vperm.xlu0 %1735, %v1536_v57   ;;  %v2185_v57 = vld [vmem:[%s2443_s4] sm:$0xff] }
  0x6a   :  { %983 = vperm.xlu1 %1736, %v1525_v60  }
  0x6b   :  { %978 = vperm.xlu0 %1735, %v1524_v61  }
  0x6e   :  { %1063 = vperm.xlu1 %1736, %v1547_v62  }
  0x6f   :  { %1058 = vperm.xlu0 %1735, %v1546_v63  }
  0x72   :  { %993 = vperm.xlu1 %1736, %v1527_v1   ;;  %v2195_v1 = vld [vmem:[%s2443_s4 + $0x18] sm:$0xff] }
  0x73   :  { %988 = vperm.xlu0 %1735, %v1526_v3  }
  0x76   :  { %1073 = vperm.xlu1 %1736, %v1549_v5   ;;  %v2200_v5 = vld [vmem:[%s2443_s4 + $0x10] sm:$0xff] }
  0x77   :  { %1068 = vperm.xlu0 %1735, %v1548_v6  }
  0x7a   :  { %1176 = vperm.xlu1 %1736, %v1168_v10  }
  0x7b   :  { %1171 = vperm.xlu0 %1735, %v1167_v12  }
  0x7e   :  { %1188 = vperm.xlu1 %1736, %v1563_v8  }
  0x7f   :  { %1183 = vperm.xlu0 %1735, %v1562_v9  }
  0x81   :  { %v193_v35 = vpop.permute.xlu0 %192  ;;  %v203_v43 = vpop.permute.xlu1 %202 }
  0x82   :  { %1307 = vperm.xlu1 %1736, %v1551_v13   ;;  %v167_v13 = vld [vmem:[%s2444_s5 + $0x8] sm:$0xff] }
  0x83   :  { %1302 = vperm.xlu0 %1735, %v1550_v16  }
  0x85   :  { %v208_v62 = vpop.permute.xlu1 %207 }
  0x86   :  { %1317 = vperm.xlu1 %1736, %v1553_v17   ;;  %v198_v48 = vpop.permute.xlu0 %197 }
  0x87   :  { %1312 = vperm.xlu0 %1735, %v1552_v18  }
  0x89   :  { %v312_v16 = vpop.permute.xlu1 %311 }
  0x8a   :  { %1335 = vperm.xlu1 %1736, %v1559_v19   ;;  %v307_v17 = vpop.permute.xlu0 %306 }
  0x8b   :  { %1330 = vperm.xlu0 %1735, %v1558_v20  }
  0x8e   :  { %1345 = vperm.xlu1 %1736, %v1561_v21  }
  0x8f   :  { %1340 = vperm.xlu0 %1735, %v1560_v22  }
  0x92   :  { %1367 = vperm.xlu1 %1736, %v1357_v25   ;;  %v319_v25 = vpop.permute.xlu0 %318 }
  0x93   :  { %1362 = vperm.xlu0 %1735, %v1356_v26  }
  0x96   :  { %1377 = vperm.xlu1 %1736, %v1359_v29  }
  0x97   :  { %1372 = vperm.xlu0 %1735, %v1358_v30  }
  0x9a   :  { %1391 = vperm.xlu1 %1736, %v1565_v23   ;;  %v324_v23 = vpop.permute.xlu1 %323 }
  0x9b   :  { %1386 = vperm.xlu0 %1735, %v1564_v24  }
  0x9e   :  { %1401 = vperm.xlu1 %1736, %v1567_v27   ;;  %v431_v30 = vpop.permute.xlu1 %430 }
  0x9f   :  { %1396 = vperm.xlu0 %1735, %v1566_v28  }
  0xa2   :  { %1423 = vperm.xlu1 %1736, %v1555_v31   ;;  %v426_v31 = vpop.permute.xlu0 %425 }
  0xa3   :  { %1418 = vperm.xlu0 %1735, %v1554_v32   ;;  %v441_v32 = vpop.permute.xlu1 %440 }
  0xa6   :  { %1433 = vperm.xlu1 %1736, %v1557_v33   ;;  %v436_v33 = vpop.permute.xlu0 %435 }
  0xa7   :  { %1428 = vperm.xlu0 %1735, %v1556_v34   ;;  %v459_v34 = vpop.permute.xlu1 %458 }
  0xdc   :  { %v1622_v38 = vpop.f32.mrb[0].mxu1 }
  0xdd   :  { %v145_v40 = vadd.f32 %v1622_v38, %v2135_v36  ;;  %v139_v41 = vpop.f32.mrb[1].mxu1  ;;  %v469_v38 = vpop.permute.xlu1 %468 }
  0xde   :  { %v140_v44 = vadd.f32 %v139_v41, %v2140_v37 }
  0xdf   :  { %v163_v46 = vsub.f32 %v145_v40, %v2145_v39 }
  0xe0   :  { %v162_v49 = vsub.f32 %v140_v44, %v2151_v42  ;;  %v1625_v50 = vpop.f32.mrb[2].mxu1 }
  0xe1   :  { %v211_v53 = vmul.f32 %v198_v48, %v163_v46  ;;  %v155_v54 = vadd.f32 %v1625_v50, %v2157_v45  ;;  %v149_v55 = vpop.f32.mrb[3].mxu1  ;;  %v491_v41 = vpop.permute.xlu1 %490 }
  0xe2   :  { %v210_v58 = vmul.f32 %v193_v35, %v162_v49  ;;  %v150_v59 = vadd.f32 %v149_v55, %v2163_v47  ;;  %v454_v35 = vpop.permute.xlu0 %453 }
  0xe3   :  { %v165_v60 = vsub.f32 %v155_v54, %v2169_v51  ;;  %v215_v61 = vadd.f32 %v211_v53, %v2174_v52 }
  0xe4   :  { %v164_v63 = vsub.f32 %v150_v59, %v2180_v56  ;;  %v214_v0 = vadd.f32 %v210_v58, %v2185_v57 }
  0xe5   :  { %v213_v3 = vmul.f32 %v208_v62, %v165_v60  ;;  %v515_v44 = vpop.permute.xlu1 %514 }
  0xe6   :  { %v212_v6 = vmul.f32 %v203_v43, %v164_v63  ;;  %v1693_v8 = vpack.c.bf16 %v215_v61, %v214_v0  ;;  %v464_v40 = vpop.permute.xlu0 %463 }
  0xe7   :  { %v217_v9 = vadd.f32 %v213_v3, %v2195_v1 }
  0xe8   :  { %1694 = vmatprep.subr.bf16.mxu1 %v1693_v8  ;;  %v216_v10 = vadd.f32 %v212_v6, %v2200_v5 }
  0xe9   :  { %1696 = vmatpush3.bf16.msra.mxu1 %v1693_v8  ;;  %v501_v48 = vpop.permute.xlu1 %500 }
  0xea   :  { %v1697_v12 = vpack.c.bf16 %v217_v9, %v216_v10  ;;  %v486_v43 = vpop.permute.xlu0 %485 }
  0xec   :  { %1698 = vmatprep.subr.bf16.mxu1 %v1697_v12 }
  0xed   :  { %1700 = vmatpush3.bf16.msra.mxu1 %v1697_v12  ;;  %v525_v54 = vpop.permute.xlu1 %524 }
  0xee   :  { %v510_v46 = vpop.permute.xlu0 %509 }
  0xf0   :  { %1635 = vmatmul.mubr.msk.f32.vlgmr.msra.gmra.mrb[4].mxu1 %vm218_vm1, %v167_v13 }
  0xf1   :  { %v547_v10 = vpop.permute.xlu1 %546 }
 0x1c3   :  { %v1636_v18 = vpop.f32.mrb[4].mxu1 }
 0x1c4   :  { %v301_v19 = vsub.f32 %v1902_v4, %v1636_v18  ;;  %v291_v20 = vpop.f32.mrb[5].mxu1 }
 0x1c5   :  { %v300_v21 = vsub.f32 %v1897_v2, %v291_v20  ;;  %v1514_v2 = vld [vmem:[%s2444_s5 + $0x10] sm:$0xff] }
 0x1c6   :  { %v315_v22 = vmax.f32 %v312_v16, %v301_v19  ;;  %1655 = vmatprep.mubr.msk.f32.mxu1 %vm218_vm1, %v1514_v2 }
 0x1c7   :  { %v314_v24 = vmax.f32 %v307_v17, %v300_v21 }
 0x1c8   :  { %v327_v26 = vmin.f32 %v324_v23, %v315_v22 }
 0x1c9   :  { %v326_v27 = vmin.f32 %v319_v25, %v314_v24 }
 0x1ca   :  { %v2210_v28 = vsub.f32 %v301_v19, %v327_v26 }
 0x1cb   :  { %v2212_v29 = vsub.f32 %v300_v21, %v326_v27  ;;  %v624_v27 = vpop.permute.xlu1 %623 }
 0x1cc   :  { %568 = vst [vmem:[#allocation2 + $0x8] sm:$0xff] %v2210_v28 }
 0x1cd   :  { %567 = vst [vmem:[#allocation2] sm:$0xff] %v2212_v29  ;;  %v1701_v4 = vpack.c.bf16 %v2210_v28, %v2212_v29 }
 0x1cf   :  { %1702 = vmatprep.subr.bf16.mxu0 %v1701_v4 }
 0x1d0   :  { %1704 = vmatpush3.bf16.msra.mxu0 %v1701_v4 }
 0x1d3   :  { %1642 = vmatmul.mubr.msk.f32.vlgmr.msra.gmra.mrb[0].mxu0 %vm60_vm0, %v1930_v11 }
 0x1d4   :  { %1644 = vmatprep.mubr.msk.f32.mxu0 %vm60_vm0, %v1935_v14 }
 0x1d7   :  { %1645 = vmatmul.mubr.msk.f32.gmra.mrb[2].mxu0 %vm60_vm0, %v1944_v15 }
 0x1d8   :  { %1662 = vmatprep.mubr.msk.f32.mxu0 %vm60_vm0, %v1912_v7  ;;  %v496_v7 = vpop.permute.xlu0 %495 }
 0x1dc   :  { %v520_v58 = vpop.permute.xlu0 %519 }
 0x1e0   :  { %v542_v16 = vpop.permute.xlu0 %541 }
 0x2a6   :  { %v1643_v49 = vpop.f32.mrb[0].mxu0 }
 0x2a7   :  { %v416_v50 = vsub.f32 %v1643_v49, %v2145_v39  ;;  %v396_v53 = vpop.f32.mrb[1].mxu0 }
 0x2a8   :  { %v415_v55 = vsub.f32 %v396_v53, %v2151_v42 }
 0x2a9   :  { %v420_v59 = vadd.f32 %v416_v50, %v2135_v36 }
 0x2aa   :  { %v419_v60 = vadd.f32 %v415_v55, %v2140_v37  ;;  %v1646_v61 = vpop.f32.mrb[2].mxu0 }
 0x2ab   :  { %v444_v62 = vmul.f32 %v431_v30, %v420_v59  ;;  %v418_v63 = vsub.f32 %v1646_v61, %v2169_v51  ;;  %v406_v0 = vpop.f32.mrb[3].mxu0  ;;  %v619_v30 = vpop.permute.xlu0 %618 }
 0x2ac   :  { %v443_v3 = vmul.f32 %v426_v31, %v419_v60  ;;  %v417_v6 = vsub.f32 %v406_v0, %v2180_v56 }
 0x2ad   :  { %v448_v8 = vadd.f32 %v444_v62, %v2174_v52  ;;  %v422_v9 = vadd.f32 %v418_v63, %v2157_v45 }
 0x2ae   :  { %v447_v12 = vadd.f32 %v443_v3, %v2185_v57  ;;  %v421_v13 = vadd.f32 %v417_v6, %v2163_v47 }
 0x2af   :  { %v472_v17 = vmul.f32 %v459_v34, %v448_v8  ;;  %v446_v18 = vmul.f32 %v441_v32, %v422_v9 }
 0x2b0   :  { %v471_v19 = vmul.f32 %v454_v35, %v447_v12  ;;  %v445_v20 = vmul.f32 %v436_v33, %v421_v13 }
 0x2b1   :  { %v476_v21 = vsub.f32 %v2135_v36, %v472_v17  ;;  %v450_v22 = vadd.f32 %v446_v18, %v2195_v1 }
 0x2b2   :  { %v475_v23 = vsub.f32 %v2140_v37, %v471_v19  ;;  %v449_v24 = vadd.f32 %v445_v20, %v2200_v5 }
 0x2b3   :  { %v504_v25 = vmax.f32 %v491_v41, %v476_v21  ;;  %v474_v26 = vmul.f32 %v469_v38, %v450_v22  ;;  %v557_v41 = vpop.permute.xlu1 %556 }
 0x2b4   :  { %v503_v4 = vmax.f32 %v486_v43, %v475_v23  ;;  %v473_v2 = vmul.f32 %v464_v40, %v449_v24  ;;  %v552_v43 = vpop.permute.xlu0 %551 }
 0x2b5   :  { %v528_v31 = vmin.f32 %v515_v44, %v504_v25  ;;  %v478_v34 = vsub.f32 %v2157_v45, %v474_v26 }
 0x2b6   :  { %v527_v32 = vmin.f32 %v510_v46, %v503_v4  ;;  %v477_v33 = vsub.f32 %v2163_v47, %v473_v2 }
 0x2b7   :  { %v2246_v35 = vsub.f32 %v476_v21, %v528_v31  ;;  %v506_v36 = vmax.f32 %v501_v48, %v478_v34 }
 0x2b8   :  { %v2248_v49 = vsub.f32 %v475_v23, %v527_v32  ;;  %v505_v37 = vmax.f32 %v496_v7, %v477_v33  ;;  %v629_v0 = vpop.permute.xlu0 %628 }
 0x2b9   :  { %v536_v53 = vadd.f32 %v2246_v35, %v416_v50  ;;  %570 = vst [vmem:[#allocation4 + $0x8] sm:$0xff] %v2246_v35  ;;  %v530_v38 = vmin.f32 %v525_v54, %v506_v36 }
 0x2ba   :  { %v535_v40 = vadd.f32 %v2248_v49, %v415_v55  ;;  %569 = vst [vmem:[#allocation4] sm:$0xff] %v2248_v49  ;;  %v529_v45 = vmin.f32 %v520_v58, %v505_v37 }
 0x2bb   :  { %v560_v44 = vmul.f32 %v547_v10, %v536_v53  ;;  %v2254_v47 = vsub.f32 %v478_v34, %v530_v38  ;;  %v637_v50 = vmul.f32 %v624_v27, %v536_v53 }
 0x2bc   :  { %v559_v46 = vmul.f32 %v542_v16, %v535_v40  ;;  %v2256_v48 = vsub.f32 %v477_v33, %v529_v45  ;;  %v636_v55 = vmul.f32 %v619_v30, %v535_v40  ;;  %v732_v16 = vpop.permute.xlu0 %731 }
 0x2bd   :  { %v2259_v7 = vadd.f32 %v560_v44, %v2174_v52  ;;  %v538_v59 = vadd.f32 %v2254_v47, %v418_v63  ;;  %572 = vst [vmem:[#allocation4 + $0x18] sm:$0xff] %v2254_v47  ;;  %v634_v52 = vpop.permute.xlu1 %633 }
 0x2be   :  { %v2264_v54 = vadd.f32 %v559_v46, %v2185_v57  ;;  %v537_v58 = vadd.f32 %v2256_v48, %v417_v6  ;;  %571 = vst [vmem:[#allocation4 + $0x10] sm:$0xff] %v2256_v48 }
 0x2bf   :  { %574 = vst [vmem:[#allocation6 + $0x8] sm:$0xff] %v2259_v7  ;;  %v562_v60 = vmul.f32 %v557_v41, %v538_v59  ;;  %v641_v61 = vadd.f32 %v637_v50, %v2259_v7  ;;  %v639_v3 = vmul.f32 %v634_v52, %v538_v59 }
 0x2c0   :  { %573 = vst [vmem:[#allocation6] sm:$0xff] %v2264_v54  ;;  %v561_v62 = vmul.f32 %v552_v43, %v537_v58  ;;  %v640_v63 = vadd.f32 %v636_v55, %v2264_v54  ;;  %v638_v8 = vmul.f32 %v629_v0, %v537_v58  ;;  %v744_v24 = vpop.permute.xlu0 %743 }
 0x2c1   :  { %v2273_v57 = vadd.f32 %v562_v60, %v2195_v1  ;;  %v1515_v1 = vld [vmem:[%s2444_s5 + $0x18] sm:$0xff] }
 0x2c2   :  { %v2276_v6 = vadd.f32 %v561_v62, %v2200_v5  ;;  %v1705_v9 = vpack.c.bf16 %v641_v61, %v640_v63  ;;  %v737_v5 = vpop.permute.xlu1 %736 }
 0x2c3   :  { %576 = vst [vmem:[#allocation6 + $0x18] sm:$0xff] %v2273_v57  ;;  %v643_v10 = vadd.f32 %v639_v3, %v2273_v57 }
 0x2c4   :  { %575 = vst [vmem:[#allocation6 + $0x10] sm:$0xff] %v2276_v6  ;;  %1706 = vmatprep.subr.bf16.mxu1 %v1705_v9  ;;  %v642_v12 = vadd.f32 %v638_v8, %v2276_v6  ;;  %v863_v30 = vpop.permute.xlu0 %862 }
 0x2c5   :  { %1708 = vmatpush3.bf16.msra.mxu1 %v1705_v9 }
 0x2c6   :  { %v1709_v13 = vpack.c.bf16 %v643_v10, %v642_v12  ;;  %v749_v22 = vpop.permute.xlu1 %748 }
 0x2c8   :  { %1710 = vmatprep.subr.bf16.mxu1 %v1709_v13  ;;  %v873_v34 = vpop.permute.xlu0 %872 }
 0x2c9   :  { %1712 = vmatpush3.bf16.msra.mxu1 %v1709_v13 }
 0x2ca   :  { %v868_v2 = vpop.permute.xlu1 %867 }
 0x2cc   :  { %1656 = vmatmul.mubr.msk.f32.vlgmr.msra.gmra.mrb[6].mxu1 %vm218_vm1, %v1515_v1  ;;  %v891_v33 = vpop.permute.xlu0 %890 }
 0x2ce   :  { %v878_v31 = vpop.permute.xlu1 %877 }
 0x2d0   :  { %v901_v37 = vpop.permute.xlu0 %900 }
 0x2d2   :  { %v896_v32 = vpop.permute.xlu1 %895 }
 0x2d4   :  { %v923_v38 = vpop.permute.xlu0 %922 }
 0x2d6   :  { %v906_v36 = vpop.permute.xlu1 %905 }
 0x2d8   :  { %v947_v40 = vpop.permute.xlu0 %946 }
 0x2da   :  { %v928_v53 = vpop.permute.xlu1 %927 }
 0x2dc   :  { %v933_v43 = vpop.permute.xlu0 %932 }
 0x2de   :  { %v952_v41 = vpop.permute.xlu1 %951 }
 0x2e0   :  { %v957_v58 = vpop.permute.xlu0 %956 }
 0x2e2   :  { %v938_v45 = vpop.permute.xlu1 %937 }
 0x2e6   :  { %v962_v59 = vpop.permute.xlu1 %961 }
 0x2ea   :  { %v984_v12 = vpop.permute.xlu1 %983 }
 0x39f   :  { %v1657_v17 = vpop.f32.mrb[6].mxu1 }
 0x3a0   :  { %v726_v18 = vsub.f32 %v2210_v28, %v1657_v17  ;;  %v716_v19 = vpop.f32.mrb[7].mxu1 }
 0x3a1   :  { %v725_v20 = vsub.f32 %v2212_v29, %v716_v19  ;;  %v1544_v29 = vld [vmem:[%s2444_s5 + $0x20] sm:$0xff] }
 0x3a2   :  { %v740_v21 = vmax.f32 %v737_v5, %v726_v18  ;;  %1676 = vmatprep.mubr.msk.f32.mxu1 %vm218_vm1, %v1544_v29  ;;  %v979_v5 = vpop.permute.xlu0 %978 }
 0x3a3   :  { %v739_v23 = vmax.f32 %v732_v16, %v725_v20 }
 0x3a4   :  { %v752_v25 = vmin.f32 %v749_v22, %v740_v21 }
 0x3a5   :  { %v751_v26 = vmin.f32 %v744_v24, %v739_v23 }
 0x3a6   :  { %v2288_v27 = vsub.f32 %v726_v18, %v752_v25 }
 0x3a7   :  { %v2290_v4 = vsub.f32 %v725_v20, %v751_v26  ;;  %v1064_v26 = vpop.permute.xlu1 %1063 }
 0x3a8   :  { %1006 = vst [vmem:[#allocation2 + $0x18] sm:$0xff] %v2288_v27 }
 0x3a9   :  { %1005 = vst [vmem:[#allocation2 + $0x10] sm:$0xff] %v2290_v4  ;;  %v1713_v28 = vpack.c.bf16 %v2288_v27, %v2290_v4 }
 0x3ab   :  { %1714 = vmatprep.subr.bf16.mxu0 %v1713_v28 }
 0x3ac   :  { %1716 = vmatpush3.bf16.msra.mxu0 %v1713_v28 }
 0x3af   :  { %1663 = vmatmul.mubr.msk.f32.vlgmr.msra.gmra.mrb[4].mxu0 %vm60_vm0, %v1930_v11 }
 0x3b0   :  { %1665 = vmatprep.mubr.msk.f32.mxu0 %vm60_vm0, %v1935_v14 }
 0x3b3   :  { %1666 = vmatmul.mubr.msk.f32.gmra.mrb[6].mxu0 %vm60_vm0, %v1944_v15 }
 0x482   :  { %v1664_v44 = vpop.f32.mrb[4].mxu0 }
 0x483   :  { %v853_v46 = vsub.f32 %v1664_v44, %v2145_v39  ;;  %v833_v50 = vpop.f32.mrb[5].mxu0 }
 0x484   :  { %v852_v55 = vsub.f32 %v833_v50, %v2151_v42 }
 0x485   :  { %v857_v60 = vadd.f32 %v853_v46, %v2246_v35 }
 0x486   :  { %v856_v61 = vadd.f32 %v852_v55, %v2248_v49  ;;  %v1667_v52 = vpop.f32.mrb[6].mxu0 }
 0x487   :  { %v881_v62 = vmul.f32 %v868_v2, %v857_v60  ;;  %v855_v63 = vsub.f32 %v1667_v52, %v2169_v51  ;;  %v843_v0 = vpop.f32.mrb[7].mxu0  ;;  %v1059_v2 = vpop.permute.xlu0 %1058 }
 0x488   :  { %v880_v3 = vmul.f32 %v863_v30, %v856_v61  ;;  %v854_v8 = vsub.f32 %v843_v0, %v2180_v56 }
 0x489   :  { %v885_v9 = vadd.f32 %v881_v62, %v2259_v7  ;;  %v859_v10 = vadd.f32 %v855_v63, %v2254_v47 }
 0x48a   :  { %v884_v13 = vadd.f32 %v880_v3, %v2264_v54  ;;  %v858_v1 = vadd.f32 %v854_v8, %v2256_v48 }
 0x48b   :  { %v909_v16 = vmul.f32 %v896_v32, %v885_v9  ;;  %v883_v17 = vmul.f32 %v878_v31, %v859_v10 }
 0x48c   :  { %v908_v18 = vmul.f32 %v891_v33, %v884_v13  ;;  %v882_v19 = vmul.f32 %v873_v34, %v858_v1 }
 0x48d   :  { %v913_v20 = vsub.f32 %v2246_v35, %v909_v16  ;;  %v887_v21 = vadd.f32 %v883_v17, %v2273_v57 }
 0x48e   :  { %v912_v22 = vsub.f32 %v2248_v49, %v908_v18  ;;  %v886_v23 = vadd.f32 %v882_v19, %v2276_v6 }
 0x48f   :  { %v941_v24 = vmax.f32 %v928_v53, %v913_v20  ;;  %v911_v25 = vmul.f32 %v906_v36, %v887_v21  ;;  %v994_v53 = vpop.permute.xlu1 %993 }
 0x490   :  { %v940_v28 = vmax.f32 %v923_v38, %v912_v22  ;;  %v910_v29 = vmul.f32 %v901_v37, %v886_v23  ;;  %v989_v38 = vpop.permute.xlu0 %988 }
 0x491   :  { %v965_v30 = vmin.f32 %v952_v41, %v941_v24  ;;  %v915_v32 = vsub.f32 %v2254_v47, %v911_v25 }
 0x492   :  { %v964_v31 = vmin.f32 %v947_v40, %v940_v28  ;;  %v914_v34 = vsub.f32 %v2256_v48, %v910_v29 }
 0x493   :  { %v2322_v33 = vsub.f32 %v913_v20, %v965_v30  ;;  %v943_v35 = vmax.f32 %v938_v45, %v915_v32 }
 0x494   :  { %v2324_v44 = vsub.f32 %v912_v22, %v964_v31  ;;  %v942_v49 = vmax.f32 %v933_v43, %v914_v34  ;;  %v1069_v0 = vpop.permute.xlu0 %1068 }
 0x495   :  { %v973_v50 = vadd.f32 %v2322_v33, %v853_v46  ;;  %1009 = vst [vmem:[#allocation4 + $0x28] sm:$0xff] %v2322_v33  ;;  %v967_v36 = vmin.f32 %v962_v59, %v943_v35 }
 0x496   :  { %v972_v37 = vadd.f32 %v2324_v44, %v852_v55  ;;  %1008 = vst [vmem:[#allocation4 + $0x20] sm:$0xff] %v2324_v44  ;;  %v966_v47 = vmin.f32 %v957_v58, %v942_v49 }
 0x497   :  { %v997_v41 = vmul.f32 %v984_v12, %v973_v50  ;;  %v2330_v48 = vsub.f32 %v915_v32, %v967_v36  ;;  %v1077_v46 = vmul.f32 %v1064_v26, %v973_v50 }
 0x498   :  { %v996_v40 = vmul.f32 %v979_v5, %v972_v37  ;;  %v2332_v45 = vsub.f32 %v914_v34, %v966_v47  ;;  %v1076_v55 = vmul.f32 %v1059_v2, %v972_v37  ;;  %v1172_v16 = vpop.permute.xlu0 %1171 }
 0x499   :  { %v2335_v43 = vadd.f32 %v997_v41, %v2259_v7  ;;  %v975_v60 = vadd.f32 %v2330_v48, %v855_v63  ;;  %1011 = vst [vmem:[#allocation4 + $0x38] sm:$0xff] %v2330_v48  ;;  %v1074_v7 = vpop.permute.xlu1 %1073 }
 0x49a   :  { %v2340_v59 = vadd.f32 %v996_v40, %v2264_v54  ;;  %v974_v58 = vadd.f32 %v2332_v45, %v854_v8  ;;  %1010 = vst [vmem:[#allocation4 + $0x30] sm:$0xff] %v2332_v45 }
 0x49b   :  { %1014 = vst [vmem:[#allocation6 + $0x28] sm:$0xff] %v2335_v43  ;;  %v999_v61 = vmul.f32 %v994_v53, %v975_v60  ;;  %v1081_v52 = vadd.f32 %v1077_v46, %v2335_v43  ;;  %v1079_v3 = vmul.f32 %v1074_v7, %v975_v60 }
 0x49c   :  { %1013 = vst [vmem:[#allocation6 + $0x20] sm:$0xff] %v2340_v59  ;;  %v998_v62 = vmul.f32 %v989_v38, %v974_v58  ;;  %v1080_v63 = vadd.f32 %v1076_v55, %v2340_v59  ;;  %v1078_v9 = vmul.f32 %v1069_v0, %v974_v58  ;;  %v1184_v24 = vpop.permute.xlu0 %1183 }
 0x49d   :  { %v2349_v54 = vadd.f32 %v999_v61, %v2273_v57  ;;  %v1545_v57 = vld [vmem:[%s2444_s5 + $0x28] sm:$0xff]  ;;  %v1177_v5 = vpop.permute.xlu1 %1176 }
 0x49e   :  { %v2352_v8 = vadd.f32 %v998_v62, %v2276_v6  ;;  %v1717_v10 = vpack.c.bf16 %v1081_v52, %v1080_v63  ;;  %v1021_v6 = vld [vmem:[%s2440_s1] sm:$0xff]  ;;  %s1808_s1 = smov [#allocation2]  }
 0x49f   :  { %1016 = vst [vmem:[#allocation6 + $0x38] sm:$0xff] %v2349_v54  ;;  %v1083_v12 = vadd.f32 %v1079_v3, %v2349_v54  ;;  %1683 = vmatprep.mubr.msk.f32.mxu0 %vm60_vm0, %v1021_v6  ;;  %s1462_s5 = sshll.u32 %s1808_s1, 4  ;;  %s1463_s5 = int_to_ptr.vmem [resolvable:$true] %s1462_s5 }
 0x4a0   :  { %1015 = vst [vmem:[#allocation6 + $0x30] sm:$0xff] %v2352_v8  ;;  %1718 = vmatprep.subr.bf16.mxu1 %v1717_v10  ;;  %v1082_v13 = vadd.f32 %v1078_v9, %v2352_v8  ;;  %s1737_s24 = scalar_lea.vmem %s1463_s5, 768  ;;  %p1742_p1 = scmp.lt.s32.totalorder %s1463_s5, %s1463_s5 }
 0x4a1   :  { %1720 = vmatpush3.bf16.msra.mxu1 %v1717_v10  ;;  %v1189_v22 = vpop.permute.xlu1 %1188  ;;  %p1738_p0 = scmp.ne.s32.totalorder %s1463_s5, %s1737_s24  ;;  %p1743_p2 = scmp.lt.s32.totalorder %s1737_s24, %s1737_s24 }
 0x4a2   :  { %v1721_v1 = vpack.c.bf16 %v1083_v12, %v1082_v13 }
 0x4a3   :  { %p1744_p3 = por %p1743_p2, %p1742_p1 }
 0x4a4   :  { %1722 = vmatprep.subr.bf16.mxu1 %v1721_v1 }
 0x4a5   :  { %1724 = vmatpush3.bf16.msra.mxu1 %v1721_v1  ;;  %p1745_p4 = pnand %p1744_p3, %p1738_p0 }
 0x4a8   :  { %1677 = vmatmul.mubr.msk.f32.vlgmr.msra.gmra.mrb[8].mxu1 %vm218_vm1, %v1545_v57 }
 0x57b   :  { %v1678_v17 = vpop.f32.mrb[8].mxu1 }
 0x57c   :  { %v1166_v18 = vsub.f32 %v2288_v27, %v1678_v17  ;;  %v1156_v19 = vpop.f32.mrb[9].mxu1 }
 0x57d   :  { %v1165_v20 = vsub.f32 %v2290_v4, %v1156_v19 }
 0x57e   :  { %v1180_v21 = vmax.f32 %v1177_v5, %v1166_v18 }
 0x57f   :  { %v1179_v23 = vmax.f32 %v1172_v16, %v1165_v20 }
 0x580   :  { %v1192_v25 = vmin.f32 %v1189_v22, %v1180_v21 }
 0x581   :  { %v1191_v26 = vmin.f32 %v1184_v24, %v1179_v23 }
 0x582   :  { %v1194_v28 = vsub.f32 %v1166_v18, %v1192_v25 }
 0x583   :  { %v1193_v29 = vsub.f32 %v1165_v20, %v1191_v26 }
 0x584   :  { %1446 = vst [vmem:[#allocation2 + $0x28] sm:$0xff] %v1194_v28 }
 0x585   :  { %1445 = vst [vmem:[#allocation2 + $0x20] sm:$0xff] %v1193_v29  ;;  %v1725_v2 = vpack.c.bf16 %v1194_v28, %v1193_v29 }
 0x587   :  { %1726 = vmatprep.subr.bf16.mxu0 %v1725_v2 }
 0x588   :  { %1728 = vmatpush3.bf16.msra.mxu0 %v1725_v2 }
 0x58b   :  { %1684 = vmatmul.mubr.msk.f32.vlgmr.msra.gmra.mrb[8].mxu0 %vm60_vm0, %v1930_v11 }
 0x58c   :  { %1686 = vmatprep.mubr.msk.f32.mxu0 %vm60_vm0, %v1935_v14 }
 0x58f   :  { %1687 = vmatmul.mubr.msk.f32.gmra.mrb[10].mxu0 %vm60_vm0, %v1944_v15 }
 0x590   :  { %1748 = shalt.err (!%p1745_p4)
}
 0x591   :  { %s1749_s6 = scalar_lea.hbm %s2451_s12, 768 }
 0x592   :  { %p1750_p5 = scmp.ne.s32.totalorder %s2451_s12, %s1749_s6  ;;  %p1753_p6 = scmp.lt.u32.totalorder %s1749_s6, %s2451_s12 }
 0x594   :  { %p1755_p7 = pnand %p1753_p6, %p1750_p5 }
 0x596   :  { %1758 = shalt.err (!%p1755_p7)
}
 0x597   :  { %s1809_s10 = smov 128   ;;  %s1810_s28 = smov 8   ;;  %v1308_v11 = vpop.permute.xlu1 %1307  ;;  %v1303_v14 = vpop.permute.xlu0 %1302 }
 0x598   :  { %1468 = dma.vmem_to_hbm [thread:$0]  %s1463_s5, 768, %s2451_s12, [#allocation3], %s1809_s10, %s1809_s10, %s1810_s28  }
 0x599   :  { %s1811_s12 = smov [#allocation4]   ;;  %s1812_s30 = smov [#allocation6]  }
 0x59a   :  { %s1474_s29 = sshll.u32 %s1811_s12, 4  ;;  %s1486_s15 = sshll.u32 %s1812_s30, 4  ;;  %s1475_s29 = int_to_ptr.vmem [resolvable:$true] %s1474_s29  ;;  %s1487_s15 = int_to_ptr.vmem [resolvable:$true] %s1486_s15 }
 0x59b   :  { %v1318_v15 = vpop.permute.xlu1 %1317  ;;  %v1313_v27 = vpop.permute.xlu0 %1312  ;;  %s1759_s16 = scalar_lea.vmem %s1475_s29, 1536  ;;  %p1764_p9 = scmp.lt.s32.totalorder %s1475_s29, %s1475_s29 }
 0x59c   :  { %p1760_p8 = scmp.ne.s32.totalorder %s1475_s29, %s1759_s16  ;;  %p1765_p10 = scmp.lt.s32.totalorder %s1759_s16, %s1759_s16 }
 0x59e   :  { %p1766_p11 = por %p1765_p10, %p1764_p9 }
 0x59f   :  { %v1336_v4 = vpop.permute.xlu1 %1335  ;;  %v1331_v30 = vpop.permute.xlu0 %1330 }
 0x5a0   :  { %p1767_p12 = pnand %p1766_p11, %p1760_p8 }
 0x5a3   :  { %v1346_v32 = vpop.permute.xlu1 %1345  ;;  %v1341_v31 = vpop.permute.xlu0 %1340 }
 0x5a7   :  { %v1368_v34 = vpop.permute.xlu1 %1367  ;;  %v1363_v35 = vpop.permute.xlu0 %1362 }
 0x5ab   :  { %v1378_v49 = vpop.permute.xlu1 %1377  ;;  %v1373_v36 = vpop.permute.xlu0 %1372 }
 0x5af   :  { %v1392_v58 = vpop.permute.xlu1 %1391  ;;  %v1387_v7 = vpop.permute.xlu0 %1386 }
 0x5b3   :  { %v1402_v13 = vpop.permute.xlu1 %1401  ;;  %v1397_v57 = vpop.permute.xlu0 %1396 }
 0x5b7   :  { %v1424_v23 = vpop.permute.xlu1 %1423  ;;  %v1419_v26 = vpop.permute.xlu0 %1418 }
 0x65e   :  { %v1685_v50 = vpop.f32.mrb[8].mxu0 }
 0x65f   :  { %v1293_v53 = vsub.f32 %v1685_v50, %v2145_v39  ;;  %v1273_v37 = vpop.f32.mrb[9].mxu0 }
 0x660   :  { %v1292_v47 = vsub.f32 %v1273_v37, %v2151_v42 }
 0x661   :  { %v1297_v38 = vadd.f32 %v1293_v53, %v2322_v33 }
 0x662   :  { %v1296_v41 = vadd.f32 %v1292_v47, %v2324_v44  ;;  %v1688_v40 = vpop.f32.mrb[10].mxu0 }
 0x663   :  { %v1321_v46 = vmul.f32 %v1308_v11, %v1297_v38  ;;  %v1295_v60 = vsub.f32 %v1688_v40, %v2169_v51  ;;  %v1283_v55 = vpop.f32.mrb[11].mxu0 }
 0x664   :  { %v1320_v61 = vmul.f32 %v1303_v14, %v1296_v41  ;;  %v1294_v52 = vsub.f32 %v1283_v55, %v2180_v56 }
 0x665   :  { %v1325_v62 = vadd.f32 %v1321_v46, %v2335_v43  ;;  %v1299_v39 = vadd.f32 %v1295_v60, %v2330_v48 }
 0x666   :  { %v1324_v42 = vadd.f32 %v1320_v61, %v2340_v59  ;;  %v1298_v63 = vadd.f32 %v1294_v52, %v2332_v45 }
 0x667   :  { %v1349_v0 = vmul.f32 %v1336_v4, %v1325_v62  ;;  %v1323_v3 = vmul.f32 %v1318_v15, %v1299_v39  ;;  %v1434_v4 = vpop.permute.xlu1 %1433 }
 0x668   :  { %v1348_v9 = vmul.f32 %v1331_v30, %v1324_v42  ;;  %v1322_v10 = vmul.f32 %v1313_v27, %v1298_v63 }
 0x669   :  { %v1353_v51 = vsub.f32 %v2322_v33, %v1349_v0  ;;  %v1327_v12 = vadd.f32 %v1323_v3, %v2349_v54 }
 0x66a   :  { %v1352_v56 = vsub.f32 %v2324_v44, %v1348_v9  ;;  %v1326_v1 = vadd.f32 %v1322_v10, %v2352_v8 }
 0x66b   :  { %v1381_v6 = vmax.f32 %v1368_v34, %v1353_v51  ;;  %v1351_v5 = vmul.f32 %v1346_v32, %v1327_v12 }
 0x66c   :  { %v1380_v16 = vmax.f32 %v1363_v35, %v1352_v56  ;;  %v1350_v17 = vmul.f32 %v1341_v31, %v1326_v1  ;;  %v1429_v31 = vpop.permute.xlu0 %1428 }
 0x66d   :  { %v1405_v18 = vmin.f32 %v1392_v58, %v1381_v6  ;;  %v1355_v19 = vsub.f32 %v2330_v48, %v1351_v5 }
 0x66e   :  { %v1404_v20 = vmin.f32 %v1387_v7, %v1380_v16  ;;  %v1354_v21 = vsub.f32 %v2332_v45, %v1350_v17 }
 0x66f   :  { %v1409_v22 = vsub.f32 %v1353_v51, %v1405_v18  ;;  %v1383_v33 = vmax.f32 %v1378_v49, %v1355_v19 }
 0x670   :  { %v1408_v24 = vsub.f32 %v1352_v56, %v1404_v20  ;;  %v1382_v25 = vmax.f32 %v1373_v36, %v1354_v21 }
 0x671   :  { %v1413_v44 = vadd.f32 %v1409_v22, %v1293_v53  ;;  %1449 = vst [vmem:[#allocation4 + $0x48] sm:$0xff] %v1409_v22  ;;  %v1407_v28 = vmin.f32 %v1402_v13, %v1383_v33 }
 0x672   :  { %v1412_v29 = vadd.f32 %v1408_v24, %v1292_v47  ;;  %1448 = vst [vmem:[#allocation4 + $0x40] sm:$0xff] %v1408_v24  ;;  %v1406_v2 = vmin.f32 %v1397_v57, %v1382_v25 }
 0x673   :  { %v1437_v11 = vmul.f32 %v1424_v23, %v1413_v44  ;;  %v1411_v14 = vsub.f32 %v1355_v19, %v1407_v28 }
 0x674   :  { %v1436_v48 = vmul.f32 %v1419_v26, %v1412_v29  ;;  %v1410_v15 = vsub.f32 %v1354_v21, %v1406_v2 }
 0x675   :  { %v1441_v45 = vadd.f32 %v1437_v11, %v2335_v43  ;;  %v1415_v27 = vadd.f32 %v1411_v14, %v1295_v60  ;;  %1451 = vst [vmem:[#allocation4 + $0x58] sm:$0xff] %v1411_v14 }
 0x676   :  { %v1440_v30 = vadd.f32 %v1436_v48, %v2340_v59  ;;  %v1414_v32 = vadd.f32 %v1410_v15, %v1294_v52  ;;  %1450 = vst [vmem:[#allocation4 + $0x50] sm:$0xff] %v1410_v15 }
 0x677   :  { %1454 = vst [vmem:[#allocation6 + $0x48] sm:$0xff] %v1441_v45  ;;  %v1439_v34 = vmul.f32 %v1434_v4, %v1415_v27 }
 0x678   :  { %1770 = shalt.err (!%p1767_p12)
}
 0x679   :  { %s1771_s18 = scalar_lea.hbm %s2452_s13, 1536 }
 0x67a   :  { %p1772_p13 = scmp.ne.s32.totalorder %s2452_s13, %s1771_s18  ;;  %p1775_p0 = scmp.lt.u32.totalorder %s1771_s18, %s2452_s13 }
 0x67c   :  { %p1777_p1 = pnand %p1775_p0, %p1772_p13 }
 0x67e   :  { %1780 = shalt.err (!%p1777_p1)
}
 0x67f   :  { %1480 = dma.vmem_to_hbm [thread:$0]  %s1475_s29, 1536, %s2452_s13, [#allocation5], %s1809_s10, %s1809_s10, %s1810_s28   ;;  %1453 = vst [vmem:[#allocation6 + $0x40] sm:$0xff] %v1440_v30  ;;  %v1438_v43 = vmul.f32 %v1429_v31, %v1414_v32  ;;  %v1443_v59 = vadd.f32 %v1439_v34, %v2349_v54 }
 0x680   :  { %s1781_s23 = scalar_lea.vmem %s1487_s15, 1536  ;;  %p1786_p3 = scmp.lt.s32.totalorder %s1487_s15, %s1487_s15 }
 0x681   :  { %v1442_v35 = vadd.f32 %v1438_v43, %v2352_v8  ;;  %1456 = vst [vmem:[#allocation6 + $0x58] sm:$0xff] %v1443_v59  ;;  %p1782_p2 = scmp.ne.s32.totalorder %s1487_s15, %s1781_s23  ;;  %p1787_p4 = scmp.lt.s32.totalorder %s1781_s23, %s1781_s23 }
 0x683   :  { %1455 = vst [vmem:[#allocation6 + $0x50] sm:$0xff] %v1442_v35  ;;  %p1788_p5 = por %p1787_p4, %p1786_p3 }
 0x685   :  { %p1789_p6 = pnand %p1788_p5, %p1782_p2 }
 0x687   :  { %1792 = shalt.err (!%p1789_p6)
}
 0x688   :  { %s1793_s13 = scalar_lea.hbm %s2453_s14, 1536 }
 0x689   :  { %p1794_p7 = scmp.ne.s32.totalorder %s2453_s14, %s1793_s13  ;;  %p1797_p8 = scmp.lt.u32.totalorder %s1793_s13, %s2453_s14 }
 0x68b   :  { %p1799_p9 = pnand %p1797_p8, %p1794_p7 }
 0x68d   :  { %1802 = shalt.err (!%p1799_p9)
}
 0x68e   :  { %1492 = dma.vmem_to_hbm [thread:$0]  %s1487_s15, 1536, %s2453_s14, [#allocation5], %s1809_s10, %s1809_s10, %s1810_s28  }
 0x68f   :  { %1803 = dma.done.wait [#allocation3], 768  }
 0x690   :  { %1804 = vsyncadd [#allocation3], 4294966528 }
 0x691   :  { %1805 = dma.done.wait [#allocation5], 3072  }
 0x692   :  { %1806 = vsyncadd [#allocation5], 4294964224 }
 0x693   :  { %1502 = vsyncpa [#allocation3], 1 }
 0x694   :  { %1503 = vsyncpa [#allocation5], 1 }

</bundles_post_ra>
